<compile_context>
chip_gen: v5e
topology: v5e:2x2
jax: 0.10.0
libtpu: 0.0.40
codegen_flags: <defaults>
</compile_context>

<pallas_src>
import functools

import jax
import jax.numpy as jnp
from jax.experimental import pallas as pl
from jax.experimental.pallas import tpu as pltpu


def _lstm2_kernel(x_ref, wih0_ref, whh0_ref, b0_ref, wih1_ref, whh1_ref, b1_ref,
                  o_ref, *, batch: int):
    """Two stacked unidirectional LSTM layers stepped over time (causal).

    x_ref    : (T*B, C)  time-major flattened input (row index = t*B + b)
    wih0/whh0: (C, 4C)   layer-0 weights (g-gate columns pre-scaled by 2)
    wih1/whh1: (C, 4C)   layer-1 weights (g-gate columns pre-scaled by 2)
    b0/b1    : (1, 4C)   fused biases   (g-gate columns pre-scaled by 2)
    o_ref    : (T*B, C)  layer-1 hidden states, same (t, b) flattening
    """
    TB, C = x_ref.shape
    B = batch
    T = TB // B
    G = 4 * C

    wih0 = wih0_ref[...]
    whh0 = whh0_ref[...]
    wih1 = wih1_ref[...]
    whh1 = whh1_ref[...]
    # Hoist bias broadcasts out of the loop (broadcast_in_dim is not CSE'd).
    b1 = jnp.broadcast_to(b1_ref[...], (B, G))

    # Layer-0 input projection for ALL timesteps: a single MXU matmul that is
    # fully off the serial recurrence (replaces the old wrapper einsum and its
    # xg0 HBM round trip).
    xg0 = (jnp.dot(x_ref[...], wih0, preferred_element_type=jnp.float32)
           + jnp.broadcast_to(b0_ref[...], (TB, G)))               # (T*B, 4C)

    def cell(pre_gates, c):
        # One EUP launch over the whole (B, 4C) gates vreg.  The g-gate
        # columns were pre-scaled by 2, so tanh(g) = 2*sigmoid(2g) - 1.
        s = jax.nn.sigmoid(pre_gates)
        i = s[:, 0 * C:1 * C]
        f = s[:, 1 * C:2 * C]
        g = 2.0 * s[:, 2 * C:3 * C] - 1.0
        o = s[:, 3 * C:4 * C]
        c_new = f * c + i * g
        h_new = o * jnp.tanh(c_new)
        return h_new, c_new

    # PyTorch default: zero initial hidden / cell states.
    h0 = jnp.zeros((B, C), jnp.float32)
    c0 = jnp.zeros((B, C), jnp.float32)
    h1 = jnp.zeros((B, C), jnp.float32)
    c1 = jnp.zeros((B, C), jnp.float32)

    outs = []
    # Fully unrolled static loop (T=8): states live in vregs and the LLO
    # scheduler sees across steps.  The h1 @ whh1 push for step t depends only
    # on step t-1, so it can overlap the current step's layer-0 chain (no lane
    # concat sits on the serial path into the layer-1 matmul).
    for t in range(T):
        g0 = xg0[t * B:(t + 1) * B, :] + jnp.dot(
            h0, whh0, preferred_element_type=jnp.float32)
        h0, c0 = cell(g0, c0)

        g1 = (jnp.dot(h0, wih1, preferred_element_type=jnp.float32)
              + jnp.dot(h1, whh1, preferred_element_type=jnp.float32)
              + b1)
        h1, c1 = cell(g1, c1)
        outs.append(h1)

    # Stores issued after the full recurrence (kept off the serial chain).
    for t in range(T):
        o_ref[t * B:(t + 1) * B, :] = outs[t].astype(o_ref.dtype)


@jax.jit
def sequence_modeling_forward(x, kparams):
    """x: (B, C, T) float32; kparams: pre-baked kernel params from
    prepare_kernel_params() (done once at init, not per call)."""
    B, C, T = x.shape
    wih0, whh0, b0, wih1, whh1, b1 = kparams

    # (B, C, T) -> time-major (T*B, C); XLA handles this small transpose.
    x_tbc = jnp.transpose(x, (2, 0, 1)).reshape(T * B, C)

    kernel = functools.partial(_lstm2_kernel, batch=B)
    out_flat = pl.pallas_call(
        kernel,
        out_shape=jax.ShapeDtypeStruct((T * B, C), jnp.float32),
        in_specs=[pl.BlockSpec(memory_space=pltpu.MemorySpace.VMEM)] * 7,
        out_specs=pl.BlockSpec(memory_space=pltpu.MemorySpace.VMEM),
    )(x_tbc, wih0, whh0, b0, wih1, whh1, b1)

    # (T*B, C) -> (T, B, C) -> (B, C, T); kept in XLA (lane-strided column
    # stores in-kernel would be worse).
    return jnp.transpose(out_flat.reshape(T, B, C), (1, 2, 0))


def prepare_kernel_params(params):
    """One-time bake of PyTorch-style LSTM params into kernel-ready form:
    g-gate columns scaled by 2 (so the kernel needs only one sigmoid per cell).
    Call once at init, NOT inside the jitted forward."""
    (wih0, whh0, b0), (wih1, whh1, b1) = params
    C = wih0.shape[0]

    def scale_g(w):
        return w.at[..., 2 * C:3 * C].multiply(2.0)

    return tuple(scale_g(a) for a in (wih0, whh0, b0, wih1, whh1, b1))


def init_lstm_params(key, hidden):
    """Deterministic init mimicking PyTorch nn.LSTM: U(-1/sqrt(H), 1/sqrt(H)).
    Returns weights transposed to (C, 4C) and biases fused to (1, 4C),
    PyTorch gate order (i, f, g, o)."""
    stdv = 1.0 / jnp.sqrt(hidden).astype(jnp.float32)
    params = []
    for _ in range(2):
        key, k1, k2, k3, k4 = jax.random.split(key, 5)
        w_ih = jax.random.uniform(k1, (4 * hidden, hidden), jnp.float32, -stdv, stdv)
        w_hh = jax.random.uniform(k2, (4 * hidden, hidden), jnp.float32, -stdv, stdv)
        b_ih = jax.random.uniform(k3, (4 * hidden,), jnp.float32, -stdv, stdv)
        b_hh = jax.random.uniform(k4, (4 * hidden,), jnp.float32, -stdv, stdv)
        params.append((w_ih.T, w_hh.T, (b_ih + b_hh)[None, :]))
    return tuple(params)


def sequence_modeling_ref(x, params):
    """Pure-JAX reference of the same 2-layer LSTM (for correctness check)."""
    B, C, T = x.shape
    xs = jnp.transpose(x, (0, 2, 1))  # (B, T, C)

    def run_layer(inp, wih, whh, b):
        h = jnp.zeros((B, C), jnp.float32)
        c = jnp.zeros((B, C), jnp.float32)
        outs = []
        for t in range(T):
            g = inp[:, t, :] @ wih + h @ whh + b
            i = jax.nn.sigmoid(g[:, :C])
            f = jax.nn.sigmoid(g[:, C:2 * C])
            gg = jnp.tanh(g[:, 2 * C:3 * C])
            o = jax.nn.sigmoid(g[:, 3 * C:])
            c = f * c + i * gg
            h = o * jnp.tanh(c)
            outs.append(h)
        return jnp.stack(outs, axis=1)

    (wih0, whh0, b0), (wih1, whh1, b1) = params
    y = run_layer(xs, wih0, whh0, b0)
    y = run_layer(y, wih1, whh1, b1)
    return jnp.transpose(y, (0, 2, 1))


if __name__ == "__main__":
    # Module hyper-params: L=3, H=8  -> hidden_size = 8 * 2**(3-1) = 32
    L, H = 3, 8
    hidden = H * 2 ** (L - 1)          # 32
    B, T = 2, 8                        # batch, sequence length

    key = jax.random.PRNGKey(0)
    key, kx, kp = jax.random.split(key, 3)
    x = jax.random.normal(kx, (B, hidden, T), jnp.float32)   # (B, C, T), NCL
    params = init_lstm_params(kp, hidden)
    kparams = prepare_kernel_params(params)   # one-time bake, outside the jit

    y = jax.block_until_ready(sequence_modeling_forward(x, kparams))
    y_ref = sequence_modeling_ref(x, params)

    assert y.shape == (B, hidden, T), y.shape
    # tanh-via-sigmoid and the changed f32 accumulation order perturb rounding;
    # 1e-4 covers it comfortably.
    assert jnp.allclose(y, y_ref, atol=1e-4, rtol=1e-4), float(jnp.abs(y - y_ref).max())

    print("KERNEL_OK")
</pallas_src>

<mosaic_0001>
module attributes {stable_mosaic.version = 11 : i64} {
  func.func @_lstm2_kernel(%arg0: memref<16x32xf32, #tpu.memory_space<vmem>>, %arg1: memref<32x128xf32, #tpu.memory_space<vmem>>, %arg2: memref<32x128xf32, #tpu.memory_space<vmem>>, %arg3: memref<1x128xf32, #tpu.memory_space<vmem>>, %arg4: memref<32x128xf32, #tpu.memory_space<vmem>>, %arg5: memref<32x128xf32, #tpu.memory_space<vmem>>, %arg6: memref<1x128xf32, #tpu.memory_space<vmem>>, %arg7: memref<16x32xf32, #tpu.memory_space<vmem>>) attributes {dimension_semantics = [], scalar_prefetch = 0 : i64, scratch_operands = 0 : i64, tpu.core_type = #tpu.core_type<tc>} {
    %c0 = arith.constant 0 : index
    %c0_0 = arith.constant 0 : index
    %0 = vector.load %arg1[%c0, %c0_0] : memref<32x128xf32, #tpu.memory_space<vmem>>, vector<32x128xf32>
    %c0_1 = arith.constant 0 : index
    %c0_2 = arith.constant 0 : index
    %1 = vector.load %arg2[%c0_1, %c0_2] : memref<32x128xf32, #tpu.memory_space<vmem>>, vector<32x128xf32>
    %c0_3 = arith.constant 0 : index
    %c0_4 = arith.constant 0 : index
    %2 = vector.load %arg4[%c0_3, %c0_4] : memref<32x128xf32, #tpu.memory_space<vmem>>, vector<32x128xf32>
    %c0_5 = arith.constant 0 : index
    %c0_6 = arith.constant 0 : index
    %3 = vector.load %arg5[%c0_5, %c0_6] : memref<32x128xf32, #tpu.memory_space<vmem>>, vector<32x128xf32>
    %c0_7 = arith.constant 0 : index
    %c0_8 = arith.constant 0 : index
    %4 = vector.load %arg6[%c0_7, %c0_8] : memref<1x128xf32, #tpu.memory_space<vmem>>, vector<1x128xf32>
    %5 = vector.shape_cast %4 : vector<1x128xf32> to vector<1x128xf32>
    %6 = vector.broadcast %5 : vector<1x128xf32> to vector<2x128xf32>
    %c0_9 = arith.constant 0 : index
    %c0_10 = arith.constant 0 : index
    %7 = vector.load %arg0[%c0_9, %c0_10] : memref<16x32xf32, #tpu.memory_space<vmem>>, vector<16x32xf32>
    %cst = arith.constant dense<0.000000e+00> : vector<16x128xf32>
    %8 = tpu.matmul %7, %0, %cst {dimension_numbers = #tpu.dot_dimension_numbers<[1], [0], [0], [1], [0, 0, 1, 1], [], []>} : vector<16x32xf32>, vector<32x128xf32>, vector<16x128xf32> -> vector<16x128xf32>
    %c0_11 = arith.constant 0 : index
    %c0_12 = arith.constant 0 : index
    %9 = vector.load %arg3[%c0_11, %c0_12] : memref<1x128xf32, #tpu.memory_space<vmem>>, vector<1x128xf32>
    %10 = vector.shape_cast %9 : vector<1x128xf32> to vector<1x128xf32>
    %11 = vector.broadcast %10 : vector<1x128xf32> to vector<16x128xf32>
    %12 = arith.addf %8, %11 : vector<16x128xf32>
    %cst_13 = arith.constant 0.000000e+00 : f32
    %13 = vector.broadcast %cst_13 : f32 to vector<2x32xf32>
    %cst_14 = arith.constant 0.000000e+00 : f32
    %14 = vector.broadcast %cst_14 : f32 to vector<2x32xf32>
    %cst_15 = arith.constant 0.000000e+00 : f32
    %15 = vector.broadcast %cst_15 : f32 to vector<2x32xf32>
    %cst_16 = arith.constant 0.000000e+00 : f32
    %16 = vector.broadcast %cst_16 : f32 to vector<2x32xf32>
    %17 = vector.extract_strided_slice %12 {offsets = [0, 0], sizes = [2, 128], strides = [1, 1]} : vector<16x128xf32> to vector<2x128xf32>
    %cst_17 = arith.constant dense<0.000000e+00> : vector<2x128xf32>
    %18 = tpu.matmul %13, %1, %cst_17 {dimension_numbers = #tpu.dot_dimension_numbers<[1], [0], [0], [1], [0, 0, 1, 1], [], []>} : vector<2x32xf32>, vector<32x128xf32>, vector<2x128xf32> -> vector<2x128xf32>
    %19 = arith.addf %17, %18 : vector<2x128xf32>
    %20 = arith.negf %19 : vector<2x128xf32>
    %21 = math.exp %20 : vector<2x128xf32>
    %cst_18 = arith.constant 1.000000e+00 : f32
    %22 = vector.broadcast %cst_18 : f32 to vector<2x128xf32>
    %23 = arith.addf %22, %21 : vector<2x128xf32>
    %24 = arith.divf %22, %23 : vector<2x128xf32>
    %25 = vector.extract_strided_slice %24 {offsets = [0, 0], sizes = [2, 32], strides = [1, 1]} : vector<2x128xf32> to vector<2x32xf32>
    %26 = vector.extract_strided_slice %24 {offsets = [0, 32], sizes = [2, 32], strides = [1, 1]} : vector<2x128xf32> to vector<2x32xf32>
    %27 = vector.extract_strided_slice %24 {offsets = [0, 64], sizes = [2, 32], strides = [1, 1]} : vector<2x128xf32> to vector<2x32xf32>
    %cst_19 = arith.constant 2.000000e+00 : f32
    %28 = vector.broadcast %cst_19 : f32 to vector<2x32xf32>
    %29 = arith.mulf %28, %27 : vector<2x32xf32>
    %cst_20 = arith.constant 1.000000e+00 : f32
    %30 = vector.broadcast %cst_20 : f32 to vector<2x32xf32>
    %31 = arith.subf %29, %30 : vector<2x32xf32>
    %32 = vector.extract_strided_slice %24 {offsets = [0, 96], sizes = [2, 32], strides = [1, 1]} : vector<2x128xf32> to vector<2x32xf32>
    %33 = arith.mulf %26, %14 : vector<2x32xf32>
    %34 = arith.mulf %25, %31 : vector<2x32xf32>
    %35 = arith.addf %33, %34 : vector<2x32xf32>
    %36 = math.tanh %35 : vector<2x32xf32>
    %37 = arith.mulf %32, %36 : vector<2x32xf32>
    %cst_21 = arith.constant dense<0.000000e+00> : vector<2x128xf32>
    %38 = tpu.matmul %37, %2, %cst_21 {dimension_numbers = #tpu.dot_dimension_numbers<[1], [0], [0], [1], [0, 0, 1, 1], [], []>} : vector<2x32xf32>, vector<32x128xf32>, vector<2x128xf32> -> vector<2x128xf32>
    %cst_22 = arith.constant dense<0.000000e+00> : vector<2x128xf32>
    %39 = tpu.matmul %15, %3, %cst_22 {dimension_numbers = #tpu.dot_dimension_numbers<[1], [0], [0], [1], [0, 0, 1, 1], [], []>} : vector<2x32xf32>, vector<32x128xf32>, vector<2x128xf32> -> vector<2x128xf32>
    %40 = arith.addf %38, %39 : vector<2x128xf32>
    %41 = arith.addf %40, %6 : vector<2x128xf32>
    %42 = arith.negf %41 : vector<2x128xf32>
    %43 = math.exp %42 : vector<2x128xf32>
    %cst_23 = arith.constant 1.000000e+00 : f32
    %44 = vector.broadcast %cst_23 : f32 to vector<2x128xf32>
    %45 = arith.addf %44, %43 : vector<2x128xf32>
    %46 = arith.divf %44, %45 : vector<2x128xf32>
    %47 = vector.extract_strided_slice %46 {offsets = [0, 0], sizes = [2, 32], strides = [1, 1]} : vector<2x128xf32> to vector<2x32xf32>
    %48 = vector.extract_strided_slice %46 {offsets = [0, 32], sizes = [2, 32], strides = [1, 1]} : vector<2x128xf32> to vector<2x32xf32>
    %49 = vector.extract_strided_slice %46 {offsets = [0, 64], sizes = [2, 32], strides = [1, 1]} : vector<2x128xf32> to vector<2x32xf32>
    %cst_24 = arith.constant 2.000000e+00 : f32
    %50 = vector.broadcast %cst_24 : f32 to vector<2x32xf32>
    %51 = arith.mulf %50, %49 : vector<2x32xf32>
    %cst_25 = arith.constant 1.000000e+00 : f32
    %52 = vector.broadcast %cst_25 : f32 to vector<2x32xf32>
    %53 = arith.subf %51, %52 : vector<2x32xf32>
    %54 = vector.extract_strided_slice %46 {offsets = [0, 96], sizes = [2, 32], strides = [1, 1]} : vector<2x128xf32> to vector<2x32xf32>
    %55 = arith.mulf %48, %16 : vector<2x32xf32>
    %56 = arith.mulf %47, %53 : vector<2x32xf32>
    %57 = arith.addf %55, %56 : vector<2x32xf32>
    %58 = math.tanh %57 : vector<2x32xf32>
    %59 = arith.mulf %54, %58 : vector<2x32xf32>
    %60 = vector.extract_strided_slice %12 {offsets = [2, 0], sizes = [2, 128], strides = [1, 1]} : vector<16x128xf32> to vector<2x128xf32>
    %cst_26 = arith.constant dense<0.000000e+00> : vector<2x128xf32>
    %61 = tpu.matmul %37, %1, %cst_26 {dimension_numbers = #tpu.dot_dimension_numbers<[1], [0], [0], [1], [0, 0, 1, 1], [], []>} : vector<2x32xf32>, vector<32x128xf32>, vector<2x128xf32> -> vector<2x128xf32>
    %62 = arith.addf %60, %61 : vector<2x128xf32>
    %63 = arith.negf %62 : vector<2x128xf32>
    %64 = math.exp %63 : vector<2x128xf32>
    %cst_27 = arith.constant 1.000000e+00 : f32
    %65 = vector.broadcast %cst_27 : f32 to vector<2x128xf32>
    %66 = arith.addf %65, %64 : vector<2x128xf32>
    %67 = arith.divf %65, %66 : vector<2x128xf32>
    %68 = vector.extract_strided_slice %67 {offsets = [0, 0], sizes = [2, 32], strides = [1, 1]} : vector<2x128xf32> to vector<2x32xf32>
    %69 = vector.extract_strided_slice %67 {offsets = [0, 32], sizes = [2, 32], strides = [1, 1]} : vector<2x128xf32> to vector<2x32xf32>
    %70 = vector.extract_strided_slice %67 {offsets = [0, 64], sizes = [2, 32], strides = [1, 1]} : vector<2x128xf32> to vector<2x32xf32>
    %cst_28 = arith.constant 2.000000e+00 : f32
    %71 = vector.broadcast %cst_28 : f32 to vector<2x32xf32>
    %72 = arith.mulf %71, %70 : vector<2x32xf32>
    %cst_29 = arith.constant 1.000000e+00 : f32
    %73 = vector.broadcast %cst_29 : f32 to vector<2x32xf32>
    %74 = arith.subf %72, %73 : vector<2x32xf32>
    %75 = vector.extract_strided_slice %67 {offsets = [0, 96], sizes = [2, 32], strides = [1, 1]} : vector<2x128xf32> to vector<2x32xf32>
    %76 = arith.mulf %69, %35 : vector<2x32xf32>
    %77 = arith.mulf %68, %74 : vector<2x32xf32>
    %78 = arith.addf %76, %77 : vector<2x32xf32>
    %79 = math.tanh %78 : vector<2x32xf32>
    %80 = arith.mulf %75, %79 : vector<2x32xf32>
    %cst_30 = arith.constant dense<0.000000e+00> : vector<2x128xf32>
    %81 = tpu.matmul %80, %2, %cst_30 {dimension_numbers = #tpu.dot_dimension_numbers<[1], [0], [0], [1], [0, 0, 1, 1], [], []>} : vector<2x32xf32>, vector<32x128xf32>, vector<2x128xf32> -> vector<2x128xf32>
    %cst_31 = arith.constant dense<0.000000e+00> : vector<2x128xf32>
    %82 = tpu.matmul %59, %3, %cst_31 {dimension_numbers = #tpu.dot_dimension_numbers<[1], [0], [0], [1], [0, 0, 1, 1], [], []>} : vector<2x32xf32>, vector<32x128xf32>, vector<2x128xf32> -> vector<2x128xf32>
    %83 = arith.addf %81, %82 : vector<2x128xf32>
    %84 = arith.addf %83, %6 : vector<2x128xf32>
    %85 = arith.negf %84 : vector<2x128xf32>
    %86 = math.exp %85 : vector<2x128xf32>
    %cst_32 = arith.constant 1.000000e+00 : f32
    %87 = vector.broadcast %cst_32 : f32 to vector<2x128xf32>
    %88 = arith.addf %87, %86 : vector<2x128xf32>
    %89 = arith.divf %87, %88 : vector<2x128xf32>
    %90 = vector.extract_strided_slice %89 {offsets = [0, 0], sizes = [2, 32], strides = [1, 1]} : vector<2x128xf32> to vector<2x32xf32>
    %91 = vector.extract_strided_slice %89 {offsets = [0, 32], sizes = [2, 32], strides = [1, 1]} : vector<2x128xf32> to vector<2x32xf32>
    %92 = vector.extract_strided_slice %89 {offsets = [0, 64], sizes = [2, 32], strides = [1, 1]} : vector<2x128xf32> to vector<2x32xf32>
    %cst_33 = arith.constant 2.000000e+00 : f32
    %93 = vector.broadcast %cst_33 : f32 to vector<2x32xf32>
    %94 = arith.mulf %93, %92 : vector<2x32xf32>
    %cst_34 = arith.constant 1.000000e+00 : f32
    %95 = vector.broadcast %cst_34 : f32 to vector<2x32xf32>
    %96 = arith.subf %94, %95 : vector<2x32xf32>
    %97 = vector.extract_strided_slice %89 {offsets = [0, 96], sizes = [2, 32], strides = [1, 1]} : vector<2x128xf32> to vector<2x32xf32>
    %98 = arith.mulf %91, %57 : vector<2x32xf32>
    %99 = arith.mulf %90, %96 : vector<2x32xf32>
    %100 = arith.addf %98, %99 : vector<2x32xf32>
    %101 = math.tanh %100 : vector<2x32xf32>
    %102 = arith.mulf %97, %101 : vector<2x32xf32>
    %103 = vector.extract_strided_slice %12 {offsets = [4, 0], sizes = [2, 128], strides = [1, 1]} : vector<16x128xf32> to vector<2x128xf32>
    %cst_35 = arith.constant dense<0.000000e+00> : vector<2x128xf32>
    %104 = tpu.matmul %80, %1, %cst_35 {dimension_numbers = #tpu.dot_dimension_numbers<[1], [0], [0], [1], [0, 0, 1, 1], [], []>} : vector<2x32xf32>, vector<32x128xf32>, vector<2x128xf32> -> vector<2x128xf32>
    %105 = arith.addf %103, %104 : vector<2x128xf32>
    %106 = arith.negf %105 : vector<2x128xf32>
    %107 = math.exp %106 : vector<2x128xf32>
    %cst_36 = arith.constant 1.000000e+00 : f32
    %108 = vector.broadcast %cst_36 : f32 to vector<2x128xf32>
    %109 = arith.addf %108, %107 : vector<2x128xf32>
    %110 = arith.divf %108, %109 : vector<2x128xf32>
    %111 = vector.extract_strided_slice %110 {offsets = [0, 0], sizes = [2, 32], strides = [1, 1]} : vector<2x128xf32> to vector<2x32xf32>
    %112 = vector.extract_strided_slice %110 {offsets = [0, 32], sizes = [2, 32], strides = [1, 1]} : vector<2x128xf32> to vector<2x32xf32>
    %113 = vector.extract_strided_slice %110 {offsets = [0, 64], sizes = [2, 32], strides = [1, 1]} : vector<2x128xf32> to vector<2x32xf32>
    %cst_37 = arith.constant 2.000000e+00 : f32
    %114 = vector.broadcast %cst_37 : f32 to vector<2x32xf32>
    %115 = arith.mulf %114, %113 : vector<2x32xf32>
    %cst_38 = arith.constant 1.000000e+00 : f32
    %116 = vector.broadcast %cst_38 : f32 to vector<2x32xf32>
    %117 = arith.subf %115, %116 : vector<2x32xf32>
    %118 = vector.extract_strided_slice %110 {offsets = [0, 96], sizes = [2, 32], strides = [1, 1]} : vector<2x128xf32> to vector<2x32xf32>
    %119 = arith.mulf %112, %78 : vector<2x32xf32>
    %120 = arith.mulf %111, %117 : vector<2x32xf32>
    %121 = arith.addf %119, %120 : vector<2x32xf32>
    %122 = math.tanh %121 : vector<2x32xf32>
    %123 = arith.mulf %118, %122 : vector<2x32xf32>
    %cst_39 = arith.constant dense<0.000000e+00> : vector<2x128xf32>
    %124 = tpu.matmul %123, %2, %cst_39 {dimension_numbers = #tpu.dot_dimension_numbers<[1], [0], [0], [1], [0, 0, 1, 1], [], []>} : vector<2x32xf32>, vector<32x128xf32>, vector<2x128xf32> -> vector<2x128xf32>
    %cst_40 = arith.constant dense<0.000000e+00> : vector<2x128xf32>
    %125 = tpu.matmul %102, %3, %cst_40 {dimension_numbers = #tpu.dot_dimension_numbers<[1], [0], [0], [1], [0, 0, 1, 1], [], []>} : vector<2x32xf32>, vector<32x128xf32>, vector<2x128xf32> -> vector<2x128xf32>
    %126 = arith.addf %124, %125 : vector<2x128xf32>
    %127 = arith.addf %126, %6 : vector<2x128xf32>
    %128 = arith.negf %127 : vector<2x128xf32>
    %129 = math.exp %128 : vector<2x128xf32>
    %cst_41 = arith.constant 1.000000e+00 : f32
    %130 = vector.broadcast %cst_41 : f32 to vector<2x128xf32>
    %131 = arith.addf %130, %129 : vector<2x128xf32>
    %132 = arith.divf %130, %131 : vector<2x128xf32>
    %133 = vector.extract_strided_slice %132 {offsets = [0, 0], sizes = [2, 32], strides = [1, 1]} : vector<2x128xf32> to vector<2x32xf32>
    %134 = vector.extract_strided_slice %132 {offsets = [0, 32], sizes = [2, 32], strides = [1, 1]} : vector<2x128xf32> to vector<2x32xf32>
    %135 = vector.extract_strided_slice %132 {offsets = [0, 64], sizes = [2, 32], strides = [1, 1]} : vector<2x128xf32> to vector<2x32xf32>
    %cst_42 = arith.constant 2.000000e+00 : f32
    %136 = vector.broadcast %cst_42 : f32 to vector<2x32xf32>
    %137 = arith.mulf %136, %135 : vector<2x32xf32>
    %cst_43 = arith.constant 1.000000e+00 : f32
    %138 = vector.broadcast %cst_43 : f32 to vector<2x32xf32>
    %139 = arith.subf %137, %138 : vector<2x32xf32>
    %140 = vector.extract_strided_slice %132 {offsets = [0, 96], sizes = [2, 32], strides = [1, 1]} : vector<2x128xf32> to vector<2x32xf32>
    %141 = arith.mulf %134, %100 : vector<2x32xf32>
    %142 = arith.mulf %133, %139 : vector<2x32xf32>
    %143 = arith.addf %141, %142 : vector<2x32xf32>
    %144 = math.tanh %143 : vector<2x32xf32>
    %145 = arith.mulf %140, %144 : vector<2x32xf32>
    %146 = vector.extract_strided_slice %12 {offsets = [6, 0], sizes = [2, 128], strides = [1, 1]} : vector<16x128xf32> to vector<2x128xf32>
    %cst_44 = arith.constant dense<0.000000e+00> : vector<2x128xf32>
    %147 = tpu.matmul %123, %1, %cst_44 {dimension_numbers = #tpu.dot_dimension_numbers<[1], [0], [0], [1], [0, 0, 1, 1], [], []>} : vector<2x32xf32>, vector<32x128xf32>, vector<2x128xf32> -> vector<2x128xf32>
    %148 = arith.addf %146, %147 : vector<2x128xf32>
    %149 = arith.negf %148 : vector<2x128xf32>
    %150 = math.exp %149 : vector<2x128xf32>
    %cst_45 = arith.constant 1.000000e+00 : f32
    %151 = vector.broadcast %cst_45 : f32 to vector<2x128xf32>
    %152 = arith.addf %151, %150 : vector<2x128xf32>
    %153 = arith.divf %151, %152 : vector<2x128xf32>
    %154 = vector.extract_strided_slice %153 {offsets = [0, 0], sizes = [2, 32], strides = [1, 1]} : vector<2x128xf32> to vector<2x32xf32>
    %155 = vector.extract_strided_slice %153 {offsets = [0, 32], sizes = [2, 32], strides = [1, 1]} : vector<2x128xf32> to vector<2x32xf32>
    %156 = vector.extract_strided_slice %153 {offsets = [0, 64], sizes = [2, 32], strides = [1, 1]} : vector<2x128xf32> to vector<2x32xf32>
    %cst_46 = arith.constant 2.000000e+00 : f32
    %157 = vector.broadcast %cst_46 : f32 to vector<2x32xf32>
    %158 = arith.mulf %157, %156 : vector<2x32xf32>
    %cst_47 = arith.constant 1.000000e+00 : f32
    %159 = vector.broadcast %cst_47 : f32 to vector<2x32xf32>
    %160 = arith.subf %158, %159 : vector<2x32xf32>
    %161 = vector.extract_strided_slice %153 {offsets = [0, 96], sizes = [2, 32], strides = [1, 1]} : vector<2x128xf32> to vector<2x32xf32>
    %162 = arith.mulf %155, %121 : vector<2x32xf32>
    %163 = arith.mulf %154, %160 : vector<2x32xf32>
    %164 = arith.addf %162, %163 : vector<2x32xf32>
    %165 = math.tanh %164 : vector<2x32xf32>
    %166 = arith.mulf %161, %165 : vector<2x32xf32>
    %cst_48 = arith.constant dense<0.000000e+00> : vector<2x128xf32>
    %167 = tpu.matmul %166, %2, %cst_48 {dimension_numbers = #tpu.dot_dimension_numbers<[1], [0], [0], [1], [0, 0, 1, 1], [], []>} : vector<2x32xf32>, vector<32x128xf32>, vector<2x128xf32> -> vector<2x128xf32>
    %cst_49 = arith.constant dense<0.000000e+00> : vector<2x128xf32>
    %168 = tpu.matmul %145, %3, %cst_49 {dimension_numbers = #tpu.dot_dimension_numbers<[1], [0], [0], [1], [0, 0, 1, 1], [], []>} : vector<2x32xf32>, vector<32x128xf32>, vector<2x128xf32> -> vector<2x128xf32>
    %169 = arith.addf %167, %168 : vector<2x128xf32>
    %170 = arith.addf %169, %6 : vector<2x128xf32>
    %171 = arith.negf %170 : vector<2x128xf32>
    %172 = math.exp %171 : vector<2x128xf32>
    %cst_50 = arith.constant 1.000000e+00 : f32
    %173 = vector.broadcast %cst_50 : f32 to vector<2x128xf32>
    %174 = arith.addf %173, %172 : vector<2x128xf32>
    %175 = arith.divf %173, %174 : vector<2x128xf32>
    %176 = vector.extract_strided_slice %175 {offsets = [0, 0], sizes = [2, 32], strides = [1, 1]} : vector<2x128xf32> to vector<2x32xf32>
    %177 = vector.extract_strided_slice %175 {offsets = [0, 32], sizes = [2, 32], strides = [1, 1]} : vector<2x128xf32> to vector<2x32xf32>
    %178 = vector.extract_strided_slice %175 {offsets = [0, 64], sizes = [2, 32], strides = [1, 1]} : vector<2x128xf32> to vector<2x32xf32>
    %cst_51 = arith.constant 2.000000e+00 : f32
    %179 = vector.broadcast %cst_51 : f32 to vector<2x32xf32>
    %180 = arith.mulf %179, %178 : vector<2x32xf32>
    %cst_52 = arith.constant 1.000000e+00 : f32
    %181 = vector.broadcast %cst_52 : f32 to vector<2x32xf32>
    %182 = arith.subf %180, %181 : vector<2x32xf32>
    %183 = vector.extract_strided_slice %175 {offsets = [0, 96], sizes = [2, 32], strides = [1, 1]} : vector<2x128xf32> to vector<2x32xf32>
    %184 = arith.mulf %177, %143 : vector<2x32xf32>
    %185 = arith.mulf %176, %182 : vector<2x32xf32>
    %186 = arith.addf %184, %185 : vector<2x32xf32>
    %187 = math.tanh %186 : vector<2x32xf32>
    %188 = arith.mulf %183, %187 : vector<2x32xf32>
    %189 = vector.extract_strided_slice %12 {offsets = [8, 0], sizes = [2, 128], strides = [1, 1]} : vector<16x128xf32> to vector<2x128xf32>
    %cst_53 = arith.constant dense<0.000000e+00> : vector<2x128xf32>
    %190 = tpu.matmul %166, %1, %cst_53 {dimension_numbers = #tpu.dot_dimension_numbers<[1], [0], [0], [1], [0, 0, 1, 1], [], []>} : vector<2x32xf32>, vector<32x128xf32>, vector<2x128xf32> -> vector<2x128xf32>
    %191 = arith.addf %189, %190 : vector<2x128xf32>
    %192 = arith.negf %191 : vector<2x128xf32>
    %193 = math.exp %192 : vector<2x128xf32>
    %cst_54 = arith.constant 1.000000e+00 : f32
    %194 = vector.broadcast %cst_54 : f32 to vector<2x128xf32>
    %195 = arith.addf %194, %193 : vector<2x128xf32>
    %196 = arith.divf %194, %195 : vector<2x128xf32>
    %197 = vector.extract_strided_slice %196 {offsets = [0, 0], sizes = [2, 32], strides = [1, 1]} : vector<2x128xf32> to vector<2x32xf32>
    %198 = vector.extract_strided_slice %196 {offsets = [0, 32], sizes = [2, 32], strides = [1, 1]} : vector<2x128xf32> to vector<2x32xf32>
    %199 = vector.extract_strided_slice %196 {offsets = [0, 64], sizes = [2, 32], strides = [1, 1]} : vector<2x128xf32> to vector<2x32xf32>
    %cst_55 = arith.constant 2.000000e+00 : f32
    %200 = vector.broadcast %cst_55 : f32 to vector<2x32xf32>
    %201 = arith.mulf %200, %199 : vector<2x32xf32>
    %cst_56 = arith.constant 1.000000e+00 : f32
    %202 = vector.broadcast %cst_56 : f32 to vector<2x32xf32>
    %203 = arith.subf %201, %202 : vector<2x32xf32>
    %204 = vector.extract_strided_slice %196 {offsets = [0, 96], sizes = [2, 32], strides = [1, 1]} : vector<2x128xf32> to vector<2x32xf32>
    %205 = arith.mulf %198, %164 : vector<2x32xf32>
    %206 = arith.mulf %197, %203 : vector<2x32xf32>
    %207 = arith.addf %205, %206 : vector<2x32xf32>
    %208 = math.tanh %207 : vector<2x32xf32>
    %209 = arith.mulf %204, %208 : vector<2x32xf32>
    %cst_57 = arith.constant dense<0.000000e+00> : vector<2x128xf32>
    %210 = tpu.matmul %209, %2, %cst_57 {dimension_numbers = #tpu.dot_dimension_numbers<[1], [0], [0], [1], [0, 0, 1, 1], [], []>} : vector<2x32xf32>, vector<32x128xf32>, vector<2x128xf32> -> vector<2x128xf32>
    %cst_58 = arith.constant dense<0.000000e+00> : vector<2x128xf32>
    %211 = tpu.matmul %188, %3, %cst_58 {dimension_numbers = #tpu.dot_dimension_numbers<[1], [0], [0], [1], [0, 0, 1, 1], [], []>} : vector<2x32xf32>, vector<32x128xf32>, vector<2x128xf32> -> vector<2x128xf32>
    %212 = arith.addf %210, %211 : vector<2x128xf32>
    %213 = arith.addf %212, %6 : vector<2x128xf32>
    %214 = arith.negf %213 : vector<2x128xf32>
    %215 = math.exp %214 : vector<2x128xf32>
    %cst_59 = arith.constant 1.000000e+00 : f32
    %216 = vector.broadcast %cst_59 : f32 to vector<2x128xf32>
    %217 = arith.addf %216, %215 : vector<2x128xf32>
    %218 = arith.divf %216, %217 : vector<2x128xf32>
    %219 = vector.extract_strided_slice %218 {offsets = [0, 0], sizes = [2, 32], strides = [1, 1]} : vector<2x128xf32> to vector<2x32xf32>
    %220 = vector.extract_strided_slice %218 {offsets = [0, 32], sizes = [2, 32], strides = [1, 1]} : vector<2x128xf32> to vector<2x32xf32>
    %221 = vector.extract_strided_slice %218 {offsets = [0, 64], sizes = [2, 32], strides = [1, 1]} : vector<2x128xf32> to vector<2x32xf32>
    %cst_60 = arith.constant 2.000000e+00 : f32
    %222 = vector.broadcast %cst_60 : f32 to vector<2x32xf32>
    %223 = arith.mulf %222, %221 : vector<2x32xf32>
    %cst_61 = arith.constant 1.000000e+00 : f32
    %224 = vector.broadcast %cst_61 : f32 to vector<2x32xf32>
    %225 = arith.subf %223, %224 : vector<2x32xf32>
    %226 = vector.extract_strided_slice %218 {offsets = [0, 96], sizes = [2, 32], strides = [1, 1]} : vector<2x128xf32> to vector<2x32xf32>
    %227 = arith.mulf %220, %186 : vector<2x32xf32>
    %228 = arith.mulf %219, %225 : vector<2x32xf32>
    %229 = arith.addf %227, %228 : vector<2x32xf32>
    %230 = math.tanh %229 : vector<2x32xf32>
    %231 = arith.mulf %226, %230 : vector<2x32xf32>
    %232 = vector.extract_strided_slice %12 {offsets = [10, 0], sizes = [2, 128], strides = [1, 1]} : vector<16x128xf32> to vector<2x128xf32>
    %cst_62 = arith.constant dense<0.000000e+00> : vector<2x128xf32>
    %233 = tpu.matmul %209, %1, %cst_62 {dimension_numbers = #tpu.dot_dimension_numbers<[1], [0], [0], [1], [0, 0, 1, 1], [], []>} : vector<2x32xf32>, vector<32x128xf32>, vector<2x128xf32> -> vector<2x128xf32>
    %234 = arith.addf %232, %233 : vector<2x128xf32>
    %235 = arith.negf %234 : vector<2x128xf32>
    %236 = math.exp %235 : vector<2x128xf32>
    %cst_63 = arith.constant 1.000000e+00 : f32
    %237 = vector.broadcast %cst_63 : f32 to vector<2x128xf32>
    %238 = arith.addf %237, %236 : vector<2x128xf32>
    %239 = arith.divf %237, %238 : vector<2x128xf32>
    %240 = vector.extract_strided_slice %239 {offsets = [0, 0], sizes = [2, 32], strides = [1, 1]} : vector<2x128xf32> to vector<2x32xf32>
    %241 = vector.extract_strided_slice %239 {offsets = [0, 32], sizes = [2, 32], strides = [1, 1]} : vector<2x128xf32> to vector<2x32xf32>
    %242 = vector.extract_strided_slice %239 {offsets = [0, 64], sizes = [2, 32], strides = [1, 1]} : vector<2x128xf32> to vector<2x32xf32>
    %cst_64 = arith.constant 2.000000e+00 : f32
    %243 = vector.broadcast %cst_64 : f32 to vector<2x32xf32>
    %244 = arith.mulf %243, %242 : vector<2x32xf32>
    %cst_65 = arith.constant 1.000000e+00 : f32
    %245 = vector.broadcast %cst_65 : f32 to vector<2x32xf32>
    %246 = arith.subf %244, %245 : vector<2x32xf32>
    %247 = vector.extract_strided_slice %239 {offsets = [0, 96], sizes = [2, 32], strides = [1, 1]} : vector<2x128xf32> to vector<2x32xf32>
    %248 = arith.mulf %241, %207 : vector<2x32xf32>
    %249 = arith.mulf %240, %246 : vector<2x32xf32>
    %250 = arith.addf %248, %249 : vector<2x32xf32>
    %251 = math.tanh %250 : vector<2x32xf32>
    %252 = arith.mulf %247, %251 : vector<2x32xf32>
    %cst_66 = arith.constant dense<0.000000e+00> : vector<2x128xf32>
    %253 = tpu.matmul %252, %2, %cst_66 {dimension_numbers = #tpu.dot_dimension_numbers<[1], [0], [0], [1], [0, 0, 1, 1], [], []>} : vector<2x32xf32>, vector<32x128xf32>, vector<2x128xf32> -> vector<2x128xf32>
    %cst_67 = arith.constant dense<0.000000e+00> : vector<2x128xf32>
    %254 = tpu.matmul %231, %3, %cst_67 {dimension_numbers = #tpu.dot_dimension_numbers<[1], [0], [0], [1], [0, 0, 1, 1], [], []>} : vector<2x32xf32>, vector<32x128xf32>, vector<2x128xf32> -> vector<2x128xf32>
    %255 = arith.addf %253, %254 : vector<2x128xf32>
    %256 = arith.addf %255, %6 : vector<2x128xf32>
    %257 = arith.negf %256 : vector<2x128xf32>
    %258 = math.exp %257 : vector<2x128xf32>
    %cst_68 = arith.constant 1.000000e+00 : f32
    %259 = vector.broadcast %cst_68 : f32 to vector<2x128xf32>
    %260 = arith.addf %259, %258 : vector<2x128xf32>
    %261 = arith.divf %259, %260 : vector<2x128xf32>
    %262 = vector.extract_strided_slice %261 {offsets = [0, 0], sizes = [2, 32], strides = [1, 1]} : vector<2x128xf32> to vector<2x32xf32>
    %263 = vector.extract_strided_slice %261 {offsets = [0, 32], sizes = [2, 32], strides = [1, 1]} : vector<2x128xf32> to vector<2x32xf32>
    %264 = vector.extract_strided_slice %261 {offsets = [0, 64], sizes = [2, 32], strides = [1, 1]} : vector<2x128xf32> to vector<2x32xf32>
    %cst_69 = arith.constant 2.000000e+00 : f32
    %265 = vector.broadcast %cst_69 : f32 to vector<2x32xf32>
    %266 = arith.mulf %265, %264 : vector<2x32xf32>
    %cst_70 = arith.constant 1.000000e+00 : f32
    %267 = vector.broadcast %cst_70 : f32 to vector<2x32xf32>
    %268 = arith.subf %266, %267 : vector<2x32xf32>
    %269 = vector.extract_strided_slice %261 {offsets = [0, 96], sizes = [2, 32], strides = [1, 1]} : vector<2x128xf32> to vector<2x32xf32>
    %270 = arith.mulf %263, %229 : vector<2x32xf32>
    %271 = arith.mulf %262, %268 : vector<2x32xf32>
    %272 = arith.addf %270, %271 : vector<2x32xf32>
    %273 = math.tanh %272 : vector<2x32xf32>
    %274 = arith.mulf %269, %273 : vector<2x32xf32>
    %275 = vector.extract_strided_slice %12 {offsets = [12, 0], sizes = [2, 128], strides = [1, 1]} : vector<16x128xf32> to vector<2x128xf32>
    %cst_71 = arith.constant dense<0.000000e+00> : vector<2x128xf32>
    %276 = tpu.matmul %252, %1, %cst_71 {dimension_numbers = #tpu.dot_dimension_numbers<[1], [0], [0], [1], [0, 0, 1, 1], [], []>} : vector<2x32xf32>, vector<32x128xf32>, vector<2x128xf32> -> vector<2x128xf32>
    %277 = arith.addf %275, %276 : vector<2x128xf32>
    %278 = arith.negf %277 : vector<2x128xf32>
    %279 = math.exp %278 : vector<2x128xf32>
    %cst_72 = arith.constant 1.000000e+00 : f32
    %280 = vector.broadcast %cst_72 : f32 to vector<2x128xf32>
    %281 = arith.addf %280, %279 : vector<2x128xf32>
    %282 = arith.divf %280, %281 : vector<2x128xf32>
    %283 = vector.extract_strided_slice %282 {offsets = [0, 0], sizes = [2, 32], strides = [1, 1]} : vector<2x128xf32> to vector<2x32xf32>
    %284 = vector.extract_strided_slice %282 {offsets = [0, 32], sizes = [2, 32], strides = [1, 1]} : vector<2x128xf32> to vector<2x32xf32>
    %285 = vector.extract_strided_slice %282 {offsets = [0, 64], sizes = [2, 32], strides = [1, 1]} : vector<2x128xf32> to vector<2x32xf32>
    %cst_73 = arith.constant 2.000000e+00 : f32
    %286 = vector.broadcast %cst_73 : f32 to vector<2x32xf32>
    %287 = arith.mulf %286, %285 : vector<2x32xf32>
    %cst_74 = arith.constant 1.000000e+00 : f32
    %288 = vector.broadcast %cst_74 : f32 to vector<2x32xf32>
    %289 = arith.subf %287, %288 : vector<2x32xf32>
    %290 = vector.extract_strided_slice %282 {offsets = [0, 96], sizes = [2, 32], strides = [1, 1]} : vector<2x128xf32> to vector<2x32xf32>
    %291 = arith.mulf %284, %250 : vector<2x32xf32>
    %292 = arith.mulf %283, %289 : vector<2x32xf32>
    %293 = arith.addf %291, %292 : vector<2x32xf32>
    %294 = math.tanh %293 : vector<2x32xf32>
    %295 = arith.mulf %290, %294 : vector<2x32xf32>
    %cst_75 = arith.constant dense<0.000000e+00> : vector<2x128xf32>
    %296 = tpu.matmul %295, %2, %cst_75 {dimension_numbers = #tpu.dot_dimension_numbers<[1], [0], [0], [1], [0, 0, 1, 1], [], []>} : vector<2x32xf32>, vector<32x128xf32>, vector<2x128xf32> -> vector<2x128xf32>
    %cst_76 = arith.constant dense<0.000000e+00> : vector<2x128xf32>
    %297 = tpu.matmul %274, %3, %cst_76 {dimension_numbers = #tpu.dot_dimension_numbers<[1], [0], [0], [1], [0, 0, 1, 1], [], []>} : vector<2x32xf32>, vector<32x128xf32>, vector<2x128xf32> -> vector<2x128xf32>
    %298 = arith.addf %296, %297 : vector<2x128xf32>
    %299 = arith.addf %298, %6 : vector<2x128xf32>
    %300 = arith.negf %299 : vector<2x128xf32>
    %301 = math.exp %300 : vector<2x128xf32>
    %cst_77 = arith.constant 1.000000e+00 : f32
    %302 = vector.broadcast %cst_77 : f32 to vector<2x128xf32>
    %303 = arith.addf %302, %301 : vector<2x128xf32>
    %304 = arith.divf %302, %303 : vector<2x128xf32>
    %305 = vector.extract_strided_slice %304 {offsets = [0, 0], sizes = [2, 32], strides = [1, 1]} : vector<2x128xf32> to vector<2x32xf32>
    %306 = vector.extract_strided_slice %304 {offsets = [0, 32], sizes = [2, 32], strides = [1, 1]} : vector<2x128xf32> to vector<2x32xf32>
    %307 = vector.extract_strided_slice %304 {offsets = [0, 64], sizes = [2, 32], strides = [1, 1]} : vector<2x128xf32> to vector<2x32xf32>
    %cst_78 = arith.constant 2.000000e+00 : f32
    %308 = vector.broadcast %cst_78 : f32 to vector<2x32xf32>
    %309 = arith.mulf %308, %307 : vector<2x32xf32>
    %cst_79 = arith.constant 1.000000e+00 : f32
    %310 = vector.broadcast %cst_79 : f32 to vector<2x32xf32>
    %311 = arith.subf %309, %310 : vector<2x32xf32>
    %312 = vector.extract_strided_slice %304 {offsets = [0, 96], sizes = [2, 32], strides = [1, 1]} : vector<2x128xf32> to vector<2x32xf32>
    %313 = arith.mulf %306, %272 : vector<2x32xf32>
    %314 = arith.mulf %305, %311 : vector<2x32xf32>
    %315 = arith.addf %313, %314 : vector<2x32xf32>
    %316 = math.tanh %315 : vector<2x32xf32>
    %317 = arith.mulf %312, %316 : vector<2x32xf32>
    %318 = vector.extract_strided_slice %12 {offsets = [14, 0], sizes = [2, 128], strides = [1, 1]} : vector<16x128xf32> to vector<2x128xf32>
    %cst_80 = arith.constant dense<0.000000e+00> : vector<2x128xf32>
    %319 = tpu.matmul %295, %1, %cst_80 {dimension_numbers = #tpu.dot_dimension_numbers<[1], [0], [0], [1], [0, 0, 1, 1], [], []>} : vector<2x32xf32>, vector<32x128xf32>, vector<2x128xf32> -> vector<2x128xf32>
    %320 = arith.addf %318, %319 : vector<2x128xf32>
    %321 = arith.negf %320 : vector<2x128xf32>
    %322 = math.exp %321 : vector<2x128xf32>
    %cst_81 = arith.constant 1.000000e+00 : f32
    %323 = vector.broadcast %cst_81 : f32 to vector<2x128xf32>
    %324 = arith.addf %323, %322 : vector<2x128xf32>
    %325 = arith.divf %323, %324 : vector<2x128xf32>
    %326 = vector.extract_strided_slice %325 {offsets = [0, 0], sizes = [2, 32], strides = [1, 1]} : vector<2x128xf32> to vector<2x32xf32>
    %327 = vector.extract_strided_slice %325 {offsets = [0, 32], sizes = [2, 32], strides = [1, 1]} : vector<2x128xf32> to vector<2x32xf32>
    %328 = vector.extract_strided_slice %325 {offsets = [0, 64], sizes = [2, 32], strides = [1, 1]} : vector<2x128xf32> to vector<2x32xf32>
    %cst_82 = arith.constant 2.000000e+00 : f32
    %329 = vector.broadcast %cst_82 : f32 to vector<2x32xf32>
    %330 = arith.mulf %329, %328 : vector<2x32xf32>
    %cst_83 = arith.constant 1.000000e+00 : f32
    %331 = vector.broadcast %cst_83 : f32 to vector<2x32xf32>
    %332 = arith.subf %330, %331 : vector<2x32xf32>
    %333 = vector.extract_strided_slice %325 {offsets = [0, 96], sizes = [2, 32], strides = [1, 1]} : vector<2x128xf32> to vector<2x32xf32>
    %334 = arith.mulf %327, %293 : vector<2x32xf32>
    %335 = arith.mulf %326, %332 : vector<2x32xf32>
    %336 = arith.addf %334, %335 : vector<2x32xf32>
    %337 = math.tanh %336 : vector<2x32xf32>
    %338 = arith.mulf %333, %337 : vector<2x32xf32>
    %cst_84 = arith.constant dense<0.000000e+00> : vector<2x128xf32>
    %339 = tpu.matmul %338, %2, %cst_84 {dimension_numbers = #tpu.dot_dimension_numbers<[1], [0], [0], [1], [0, 0, 1, 1], [], []>} : vector<2x32xf32>, vector<32x128xf32>, vector<2x128xf32> -> vector<2x128xf32>
    %cst_85 = arith.constant dense<0.000000e+00> : vector<2x128xf32>
    %340 = tpu.matmul %317, %3, %cst_85 {dimension_numbers = #tpu.dot_dimension_numbers<[1], [0], [0], [1], [0, 0, 1, 1], [], []>} : vector<2x32xf32>, vector<32x128xf32>, vector<2x128xf32> -> vector<2x128xf32>
    %341 = arith.addf %339, %340 : vector<2x128xf32>
    %342 = arith.addf %341, %6 : vector<2x128xf32>
    %343 = arith.negf %342 : vector<2x128xf32>
    %344 = math.exp %343 : vector<2x128xf32>
    %cst_86 = arith.constant 1.000000e+00 : f32
    %345 = vector.broadcast %cst_86 : f32 to vector<2x128xf32>
    %346 = arith.addf %345, %344 : vector<2x128xf32>
    %347 = arith.divf %345, %346 : vector<2x128xf32>
    %348 = vector.extract_strided_slice %347 {offsets = [0, 0], sizes = [2, 32], strides = [1, 1]} : vector<2x128xf32> to vector<2x32xf32>
    %349 = vector.extract_strided_slice %347 {offsets = [0, 32], sizes = [2, 32], strides = [1, 1]} : vector<2x128xf32> to vector<2x32xf32>
    %350 = vector.extract_strided_slice %347 {offsets = [0, 64], sizes = [2, 32], strides = [1, 1]} : vector<2x128xf32> to vector<2x32xf32>
    %cst_87 = arith.constant 2.000000e+00 : f32
    %351 = vector.broadcast %cst_87 : f32 to vector<2x32xf32>
    %352 = arith.mulf %351, %350 : vector<2x32xf32>
    %cst_88 = arith.constant 1.000000e+00 : f32
    %353 = vector.broadcast %cst_88 : f32 to vector<2x32xf32>
    %354 = arith.subf %352, %353 : vector<2x32xf32>
    %355 = vector.extract_strided_slice %347 {offsets = [0, 96], sizes = [2, 32], strides = [1, 1]} : vector<2x128xf32> to vector<2x32xf32>
    %356 = arith.mulf %349, %315 : vector<2x32xf32>
    %357 = arith.mulf %348, %354 : vector<2x32xf32>
    %358 = arith.addf %356, %357 : vector<2x32xf32>
    %359 = math.tanh %358 : vector<2x32xf32>
    %360 = arith.mulf %355, %359 : vector<2x32xf32>
    %c0_89 = arith.constant 0 : index
    %c0_90 = arith.constant 0 : index
    %361 = vector.load %arg7[%c0_89, %c0_90] : memref<16x32xf32, #tpu.memory_space<vmem>>, vector<2x32xf32>
    tpu.vector_store %arg7[%c0_89, %c0_90], %59 {strides = array<i32>} : memref<16x32xf32, #tpu.memory_space<vmem>>, vector<2x32xf32>,
    %c2 = arith.constant 2 : index
    %c0_91 = arith.constant 0 : index
    %362 = vector.load %arg7[%c2, %c0_91] : memref<16x32xf32, #tpu.memory_space<vmem>>, vector<2x32xf32>
    tpu.vector_store %arg7[%c2, %c0_91], %102 {strides = array<i32>} : memref<16x32xf32, #tpu.memory_space<vmem>>, vector<2x32xf32>,
    %c4 = arith.constant 4 : index
    %c0_92 = arith.constant 0 : index
    %363 = vector.load %arg7[%c4, %c0_92] : memref<16x32xf32, #tpu.memory_space<vmem>>, vector<2x32xf32>
    tpu.vector_store %arg7[%c4, %c0_92], %145 {strides = array<i32>} : memref<16x32xf32, #tpu.memory_space<vmem>>, vector<2x32xf32>,
    %c6 = arith.constant 6 : index
    %c0_93 = arith.constant 0 : index
    %364 = vector.load %arg7[%c6, %c0_93] : memref<16x32xf32, #tpu.memory_space<vmem>>, vector<2x32xf32>
    tpu.vector_store %arg7[%c6, %c0_93], %188 {strides = array<i32>} : memref<16x32xf32, #tpu.memory_space<vmem>>, vector<2x32xf32>,
    %c8 = arith.constant 8 : index
    %c0_94 = arith.constant 0 : index
    %365 = vector.load %arg7[%c8, %c0_94] : memref<16x32xf32, #tpu.memory_space<vmem>>, vector<2x32xf32>
    tpu.vector_store %arg7[%c8, %c0_94], %231 {strides = array<i32>} : memref<16x32xf32, #tpu.memory_space<vmem>>, vector<2x32xf32>,
    %c10 = arith.constant 10 : index
    %c0_95 = arith.constant 0 : index
    %366 = vector.load %arg7[%c10, %c0_95] : memref<16x32xf32, #tpu.memory_space<vmem>>, vector<2x32xf32>
    tpu.vector_store %arg7[%c10, %c0_95], %274 {strides = array<i32>} : memref<16x32xf32, #tpu.memory_space<vmem>>, vector<2x32xf32>,
    %c12 = arith.constant 12 : index
    %c0_96 = arith.constant 0 : index
    %367 = vector.load %arg7[%c12, %c0_96] : memref<16x32xf32, #tpu.memory_space<vmem>>, vector<2x32xf32>
    tpu.vector_store %arg7[%c12, %c0_96], %317 {strides = array<i32>} : memref<16x32xf32, #tpu.memory_space<vmem>>, vector<2x32xf32>,
    %c14 = arith.constant 14 : index
    %c0_97 = arith.constant 0 : index
    %368 = vector.load %arg7[%c14, %c0_97] : memref<16x32xf32, #tpu.memory_space<vmem>>, vector<2x32xf32>
    tpu.vector_store %arg7[%c14, %c0_97], %360 {strides = array<i32>} : memref<16x32xf32, #tpu.memory_space<vmem>>, vector<2x32xf32>,
    return
  }
}

</mosaic_0001>

<bundles_post_ra>
// kernel: sequence_modeling_forward.1
= control target key start
LH: loop header
LB: loop body
LE: loop exit
PB: predicated region body
PF: predicated region fallthrough
CT: control target
= control target key end

     0   :  { %12 = vsyncpa [#allocation3], 0  ;;  %s2026_s0 = inlined_call_operand.vmem [shape: f32[16,32], index: 0, kind: input, shape index: {}]   ;;  %s2027_s1 = inlined_call_operand.vmem [shape: f32[32,128], index: 1, kind: input, shape index: {}]   ;;  %s2028_s2 = inlined_call_operand.hbm [shape: f32[32,128], index: 2, kind: input, shape index: {}]   ;;  %s2029_s3 = inlined_call_operand.vmem [shape: f32[1,128], index: 3, kind: input, shape index: {}]   ;;  %s2030_s4 = inlined_call_operand.hbm [shape: f32[32,128], index: 4, kind: input, shape index: {}]   ;;  %s2031_s5 = inlined_call_operand.hbm [shape: f32[32,128], index: 5, kind: input, shape index: {}]   ;;  %s2032_s6 = inlined_call_operand.vmem [shape: f32[1,128], index: 6, kind: input, shape index: {}]   ;;  %s2033_s7 = inlined_call_operand.vmem [shape: f32[16,32], index: 7, kind: output, shape index: {}]  }
   0x1   :  { %13 = vsyncpa [#allocation5], 0  ;;  %s37_s26 = sshll.u32 %s2030_s4, 4  ;;  %s1621_s27 = smov [#allocation4]   ;;  %s38_s26 = int_to_ptr.hbm [resolvable:$true] %s37_s26 }
   0x2   :  { %s39_s28 = sshll.u32 %s1621_s27, 4  ;;  %s22_s8 = sshll.u32 %s2028_s2, 4  ;;  %s40_s28 = int_to_ptr.vmem [resolvable:$true] %s39_s28  ;;  %s23_s8 = int_to_ptr.hbm [resolvable:$true] %s22_s8 }
   0x3   :  { %s1622_s9 = smov 128   ;;  %s1623_s10 = smov 8  }
   0x4   :  { %45 = dma.hbm_to_vmem [thread:$0]  %s38_s26, 512, %s40_s28, [#allocation5], %s1622_s9, %s1622_s9, %s1623_s10  }
   0x5   :  { %s1624_s11 = smov [#allocation2]   ;;  %s50_s15 = sshll.u32 %s2031_s5, 4  ;;  %s51_s15 = int_to_ptr.hbm [resolvable:$true] %s50_s15 }
   0x6   :  { %s24_s12 = sshll.u32 %s1624_s11, 4  ;;  %s1625_s4 = smov [#allocation6]   ;;  %s25_s12 = int_to_ptr.vmem [resolvable:$true] %s24_s12 }
   0x7   :  { %30 = dma.hbm_to_vmem [thread:$0]  %s23_s8, 512, %s25_s12, [#allocation3], %s1622_s9, %s1622_s9, %s1623_s10  }
   0x8   :  { %s52_s16 = sshll.u32 %s1625_s4, 4  ;;  %s53_s16 = int_to_ptr.vmem [resolvable:$true] %s52_s16 }
   0x9   :  { %58 = dma.hbm_to_vmem [thread:$0]  %s51_s15, 512, %s53_s16, [#allocation5], %s1622_s9, %s1622_s9, %s1623_s10  }
   0xa   :  { %1617 = dma.done.wait [#allocation3], 512  }
   0xb   :  { %1618 = vsyncadd [#allocation3], 4294966784 }
   0xc   :  { %1619 = dma.done.wait [#allocation5], 1024  }
   0xd   :  { %1620 = vsyncadd [#allocation5], 4294966272  ;;  %v76_v0 = vld [vmem:[%s2027_s1 + $0x18] sm:$0xff]  ;;  %v75_v1 = vld [vmem:[%s2027_s1 + $0x10] sm:$0xff]  ;;  %vm99_vm0 = vcmask 261120   ;;  %v1626_v9 = vmov 0.0  }
   0xe   :  { %v1684_v2 = vld [vmem:[#allocation2 + $0x18] sm:$0xff]  ;;  %118 = vmatpush.msra.mxu0 %v76_v0  ;;  %v1687_v3 = vld [vmem:[#allocation2 + $0x10] sm:$0xff]  ;;  %v74_v4 = vld [vmem:[%s2027_s1 + $0x8] sm:$0xff]  ;;  %s1628_s26 = smov 32   ;;  %vm1357_vm13 = vcmask 254976  }
   0xf   :  { %144 = vmatpush.msra.mxu1 %v1684_v2  ;;  %v1692_v5 = vld [vmem:[#allocation2 + $0x8] sm:$0xff]  ;;  %v73_v6 = vld [vmem:[%s2027_s1] sm:$0xff]  ;;  %v1730_v36 = vld [vmem:[#allocation6 + $0x18] sm:$0xff] }
  0x10   :  { %119 = vmatpush.msra.mxu0 %v75_v1  ;;  %v1698_v7 = vld [vmem:[#allocation2] sm:$0xff]  ;;  %v1732_v37 = vld [vmem:[#allocation4 + $0x18] sm:$0xff]  ;;  %v1734_v38 = vld [vmem:[#allocation6 + $0x10] sm:$0xff]  ;;  %203 = vmatpush.msra.mxu2 %v1730_v36 }
  0x11   :  { %145 = vmatpush.msra.mxu1 %v1687_v3  ;;  %v93_v8 = vld [vmem:[%s2026_s0] sm:$0xff]  ;;  %228 = vmatpush.msra.mxu3 %v1732_v37  ;;  %v1738_v39 = vld [vmem:[#allocation4 + $0x10] sm:$0xff]  ;;  %v1740_v40 = vld [vmem:[#allocation6 + $0x8] sm:$0xff] }
  0x12   :  { %120 = vmatpush.msra.mxu0 %v74_v4  ;;  %v1718_v10 = vld [vmem:[%s2029_s3] ss:$0 sm:$0xff]  ;;  %s1627_s3 = smov 64   ;;  %v1742_v41 = vld [vmem:[#allocation4 + $0x8] sm:$0xff]  ;;  %204 = vmatpush.msra.mxu2 %v1734_v38 }
  0x13   :  { %146 = vmatpush.msra.mxu1 %v1692_v5  ;;  %229 = vmatpush.msra.mxu3 %v1738_v39  ;;  %v1748_v42 = vld [vmem:[#allocation6] sm:$0xff] }
  0x14   :  { %121 = vmatpush.msra.mxu0 %v73_v6  ;;  %v1750_v43 = vld [vmem:[#allocation4] sm:$0xff]  ;;  %205 = vmatpush.msra.mxu2 %v1740_v40 }
  0x15   :  { %147 = vmatpush.msra.mxu1 %v1698_v7  ;;  %1382 = vmatmul.msk.f32.vlgmr.msra.gmra.mxu0 %vm99_vm0, %v93_v8  ;;  %v1790_v52 = vld [vmem:[%s2032_s6] ss:$0 sm:$0xff] }
  0x16   :  { %148 = vmatmul.f32.vlgmr.msra.gmra.mxu1 %v1626_v9  ;;  %442 = vmatpush.msrb.mxu0 %v1684_v2 }
  0x17   :  { %287 = vmatpush.msrb.mxu1 %v1684_v2  ;;  %230 = vmatpush.msra.mxu3 %v1742_v41 }
  0x18   :  { %443 = vmatpush.msrb.mxu0 %v1687_v3  ;;  %206 = vmatpush.msra.mxu2 %v1748_v42 }
  0x19   :  { %288 = vmatpush.msrb.mxu1 %v1687_v3  ;;  %231 = vmatpush.msra.mxu3 %v1750_v43 }
  0x1a   :  { %444 = vmatpush.msrb.mxu0 %v1692_v5  ;;  %207 = vmatmul.f32.vlgmr.msra.gmra.mxu2 %v1626_v9 }
  0x1b   :  { %289 = vmatpush.msrb.mxu1 %v1692_v5  ;;  %383 = vmatpush.msrb.mxu3 %v1732_v37 }
  0x1c   :  { %445 = vmatpush.msrb.mxu0 %v1698_v7  ;;  %357 = vmatpush.msrb.mxu2 %v1730_v36 }
  0x1d   :  { %290 = vmatpush.msrb.mxu1 %v1698_v7  ;;  %384 = vmatpush.msrb.mxu3 %v1738_v39 }
  0x1e   :  { %667 = vmatpush.msra.mxu0 %v1730_v36  ;;  %358 = vmatpush.msrb.mxu2 %v1734_v38 }
  0x1f   :  { %512 = vmatpush.msra.mxu1 %v1730_v36  ;;  %385 = vmatpush.msrb.mxu3 %v1742_v41 }
  0x20   :  { %668 = vmatpush.msra.mxu0 %v1734_v38  ;;  %359 = vmatpush.msrb.mxu2 %v1740_v40 }
  0x21   :  { %513 = vmatpush.msra.mxu1 %v1734_v38  ;;  %386 = vmatpush.msrb.mxu3 %v1750_v43 }
  0x22   :  { %669 = vmatpush.msra.mxu0 %v1740_v40  ;;  %360 = vmatpush.msrb.mxu2 %v1748_v42 }
  0x23   :  { %514 = vmatpush.msra.mxu1 %v1740_v40 }
  0x24   :  { %670 = vmatpush.msra.mxu0 %v1748_v42  ;;  %538 = vmatpush.msra.mxu2 %v1732_v37 }
  0x25   :  { %515 = vmatpush.msra.mxu1 %v1748_v42 }
  0x26   :  { %539 = vmatpush.msra.mxu2 %v1738_v39 }
  0x28   :  { %540 = vmatpush.msra.mxu2 %v1742_v41 }
  0x2a   :  { %541 = vmatpush.msra.mxu2 %v1750_v43 }
  0x92   :  { %v123_v11 = vpop.f32.mrf.mxu0 }
  0x93   :  { %v149_v12 = vpop.f32.mrf.mxu1  ;;  %v1721_v13 = vadd.f32 %v1718_v10, %v123_v11 }
  0x95   :  { %v152_v14 = vadd.f32 %v149_v12, %v1721_v13 }
  0x97   :  { %v1384_v15 = vmul.f32 -1.442695, %v152_v14 }
  0x99   :  { %1448 = vpow2.f32 %v1384_v15 }
  0x9d   :  { %v208_v50 = vpop.f32.mrf.mxu2 }
  0x9f   :  { %v1449_v16 = vpop.eup %1448 }
  0xa0   :  { %v156_v17 = vadd.f32 1.0, %v1449_v16 }
  0xa2   :  { %1450 = vrcp.f32 %v156_v17  ;;  %v168_v21 = vand.u32 2147483648, %v156_v17  ;;  %v166_v23 = vand.u32 2147483647, %v156_v17  ;;  %vm162_vm2 = vweird.f32 %v156_v17 }
  0xa4   :  { %v169_v25 = vor.u32 1.1754944e-38, %v168_v21  ;;  %vm167_vm4 = vcmp.eq.f32.partialorder %v166_v23, 8.507059e+37 }
  0xa8   :  { %v1451_v18 = vpop.eup %1450 }
  0xa9   :  { %v158_v19 = vmul.f32 %v1451_v18, %v156_v17  ;;  %vm163_vm1 = vweird.f32 %v1451_v18 }
  0xaa   :  { %vm164_vm3 = vmor %vm162_vm2, %vm163_vm1 }
  0xab   :  { %v159_v20 = vsub.f32 1.0, %v158_v19 }
  0xad   :  { %v160_v22 = vmul.f32 %v1451_v18, %v159_v20 }
  0xaf   :  { %v161_v24 = vadd.f32 %v1451_v18, %v160_v22 }
  0xb1   :  { %v165_v26 = vsel %vm164_vm3, %v1451_v18, %v161_v24 }
  0xb2   :  { %v170_v27 = vsel %vm167_vm4, %v169_v25, %v165_v26 }
  0xb3   :  { %v172_v28 = vmul.f32 2.0, %v170_v27  ;;  %v174_v32 = vmul.f32 0.0, %v170_v27 }
  0xb5   :  { %v1385_v29 = vadd.f32 -1.0, %v172_v28 }
  0xb7   :  { %176 = vrot.lane.b32.xlu0 %v1385_v29, %s1627_s3 }
 0x129   :  { %v177_v30 = vpop.permute.xlu0 %176 }
 0x12a   :  { %v179_v31 = vmul.f32 %v177_v30, %v170_v27 }
 0x12c   :  { %181 = vrot.lane.b32.xlu0 %v179_v31, %s1628_s26 }
 0x19e   :  { %v182_v33 = vpop.permute.xlu0 %181 }
 0x19f   :  { %v1726_v34 = vadd.f32 %v182_v33, %v174_v32 }
 0x1a1   :  { %1452 = vtanh.f32 %v1726_v34  ;;  %v321_v31 = vrot.slane %v1726_v34, 6 }
 0x1a7   :  { %v1453_v35 = vpop.eup %1452 }
 0x1a8   :  { %187 = vrot.lane.b32.xlu1 %v1453_v35, %s1627_s3 }
 0x21a   :  { %v188_v44 = vpop.permute.xlu1 %187 }
 0x21b   :  { %v190_v45 = vmul.f32 %v188_v44, %v170_v27 }
 0x21d   :  { %212 = vrot.lane.b32.xlu1 %v190_v45, %s1628_s26 }
 0x28f   :  { %v213_v46 = vpop.permute.xlu1 %212 }
 0x290   :  { %1386 = vmatmul.msk.f32.vlgmr.msra.gmra.mxu3 %vm99_vm0, %v213_v46  ;;  %1389 = vmatmul.msk.f32.vlgmr.msrb.gmra.mxu1 %vm99_vm0, %v213_v46 }
 0x291   :  { %597 = vmatpush.msra.mxu3 %v1684_v2  ;;  %693 = vmatpush.msrb.mxu1 %v1732_v37 }
 0x293   :  { %598 = vmatpush.msra.mxu3 %v1687_v3  ;;  %694 = vmatpush.msrb.mxu1 %v1738_v39 }
 0x295   :  { %599 = vmatpush.msra.mxu3 %v1692_v5  ;;  %695 = vmatpush.msrb.mxu1 %v1742_v41 }
 0x297   :  { %600 = vmatpush.msra.mxu3 %v1698_v7  ;;  %696 = vmatpush.msrb.mxu1 %v1750_v43 }
 0x30d   :  { %v292_v47 = vpop.f32.mrf.mxu1 }
 0x30e   :  { %v296_v48 = vrot.slane %v292_v47, 6 }
 0x310   :  { %v298_v49 = vadd.f32 %v296_v48, %v1721_v13 }
 0x312   :  { %v1390_v51 = vmul.f32 -1.442695, %v298_v49 }
 0x313   :  { %v233_v53 = vpop.f32.mrf.mxu3 }
 0x314   :  { %1454 = vpow2.f32 %v1390_v51  ;;  %v234_v54 = vadd.f32 %v233_v53, %v208_v50  ;;  %v94_v51 = vld [vmem:[%s2026_s0 + $0x8] sm:$0xff] }
 0x315   :  { %1383 = vmatmul.msk.f32.gmra.mxu0 %vm99_vm0, %v94_v51 }
 0x316   :  { %v236_v55 = vadd.f32 %v1790_v52, %v234_v54 }
 0x318   :  { %v1387_v56 = vmul.f32 -1.442695, %v236_v55 }
 0x31a   :  { %v1455_v57 = vpop.eup %1454  ;;  %1456 = vpow2.f32 %v1387_v56 }
 0x31b   :  { %v302_v58 = vadd.f32 1.0, %v1455_v57 }
 0x31d   :  { %1458 = vrcp.f32 %v302_v58  ;;  %v314_v0 = vand.u32 2147483648, %v302_v58  ;;  %v312_v4 = vand.u32 2147483647, %v302_v58  ;;  %vm308_vm6 = vweird.f32 %v302_v58 }
 0x31f   :  { %v315_v11 = vor.u32 1.1754944e-38, %v314_v0  ;;  %vm313_vm8 = vcmp.eq.f32.partialorder %v312_v4, 8.507059e+37 }
 0x320   :  { %v1457_v59 = vpop.eup %1456 }
 0x321   :  { %v240_v60 = vadd.f32 1.0, %v1457_v59 }
 0x323   :  { %v1459_v61 = vpop.eup %1458  ;;  %1460 = vrcp.f32 %v240_v60  ;;  %v252_v16 = vand.u32 2147483648, %v240_v60  ;;  %v250_v19 = vand.u32 2147483647, %v240_v60  ;;  %vm246_vm10 = vweird.f32 %v240_v60 }
 0x324   :  { %v304_v62 = vmul.f32 %v1459_v61, %v302_v58  ;;  %vm309_vm5 = vweird.f32 %v1459_v61 }
 0x325   :  { %vm310_vm7 = vmor %vm308_vm6, %vm309_vm5  ;;  %v253_v22 = vor.u32 1.1754944e-38, %v252_v16  ;;  %vm251_vm12 = vcmp.eq.f32.partialorder %v250_v19, 8.507059e+37 }
 0x326   :  { %v305_v63 = vsub.f32 1.0, %v304_v62 }
 0x328   :  { %v306_v1 = vmul.f32 %v1459_v61, %v305_v63 }
 0x329   :  { %v1461_v6 = vpop.eup %1460 }
 0x32a   :  { %v242_v8 = vmul.f32 %v1461_v6, %v240_v60  ;;  %v307_v9 = vadd.f32 %v1459_v61, %v306_v1  ;;  %vm247_vm9 = vweird.f32 %v1461_v6 }
 0x32b   :  { %vm248_vm11 = vmor %vm246_vm10, %vm247_vm9 }
 0x32c   :  { %v243_v12 = vsub.f32 1.0, %v242_v8  ;;  %v311_v14 = vsel %vm310_vm7, %v1459_v61, %v307_v9 }
 0x32d   :  { %v316_v15 = vsel %vm313_vm8, %v315_v11, %v311_v14 }
 0x32e   :  { %v318_v17 = vmul.f32 2.0, %v316_v15  ;;  %v244_v18 = vmul.f32 %v1461_v6, %v243_v12  ;;  %v323_v32 = vmul.f32 %v321_v31, %v316_v15 }
 0x330   :  { %v1391_v20 = vadd.f32 -1.0, %v318_v17  ;;  %v245_v21 = vadd.f32 %v1461_v6, %v244_v18 }
 0x332   :  { %325 = vrot.lane.b32.xlu2 %v1391_v20, %s1627_s3  ;;  %v249_v23 = vsel %vm248_vm11, %v1461_v6, %v245_v21 }
 0x333   :  { %v254_v24 = vsel %vm251_vm12, %v253_v22, %v249_v23 }
 0x334   :  { %v256_v25 = vmul.f32 2.0, %v254_v24  ;;  %v258_v44 = vmul.f32 0.0, %v254_v24 }
 0x336   :  { %v1388_v26 = vadd.f32 -1.0, %v256_v25 }
 0x33a   :  { %260 = vrot.lane.b32.xlu2 %v1388_v26, %s1627_s3 }
 0x38c   :  { %v326_v27 = vpop.permute.xlu2 %325 }
 0x38d   :  { %v328_v28 = vmul.f32 %v326_v27, %v316_v15 }
 0x38f   :  { %330 = vrot.lane.b32.xlu0 %v328_v28, %s1628_s26 }
 0x392   :  { %v1831_v57 = vpop.f32.mrf.mxu0 }
 0x394   :  { %v261_v29 = vpop.permute.xlu2 %260 }
 0x395   :  { %v263_v30 = vmul.f32 %v261_v29, %v254_v24 }
 0x397   :  { %265 = vrot.lane.b32.xlu1 %v263_v30, %s1628_s26 }
 0x401   :  { %v331_v33 = vpop.permute.xlu0 %330 }
 0x402   :  { %v1798_v35 = vadd.f32 %v331_v33, %v323_v32 }
 0x404   :  { %1462 = vtanh.f32 %v1798_v35  ;;  %v476_v51 = vrot.slane %v1798_v35, 6 }
 0x409   :  { %v266_v45 = vpop.permute.xlu1 %265 }
 0x40a   :  { %v1463_v46 = vpop.eup %1462  ;;  %v1801_v47 = vadd.f32 %v266_v45, %v258_v44 }
 0x40b   :  { %336 = vrot.lane.b32.xlu2 %v1463_v46, %s1627_s3 }
 0x40c   :  { %1464 = vtanh.f32 %v1801_v47 }
 0x412   :  { %v1465_v48 = vpop.eup %1464 }
 0x413   :  { %271 = vrot.lane.b32.xlu0 %v1465_v48, %s1627_s3 }
 0x465   :  { %v337_v49 = vpop.permute.xlu2 %336 }
 0x466   :  { %v339_v34 = vmul.f32 %v337_v49, %v316_v15 }
 0x468   :  { %v366_v50 = vrot.slane %v339_v34, 2 }
 0x46a   :  { %367 = vrot.lane.b32.xlu1 %v366_v50, %s1628_s26 }
 0x485   :  { %v272_v53 = vpop.permute.xlu0 %271 }
 0x486   :  { %v274_v54 = vmul.f32 %v272_v53, %v254_v24 }
 0x488   :  { %341 = vrot.lane.b32.xlu2 %v274_v54, %s1628_s26 }
 0x4dc   :  { %v368_v55 = vpop.permute.xlu1 %367 }
 0x4dd   :  { %1393 = vmatmul.msk.f32.vlgmr.msrb.gmra.mxu3 %vm99_vm0, %v368_v55  ;;  %1396 = vmatmul.msk.f32.vlgmr.msrb.gmra.mxu0 %vm99_vm0, %v368_v55 }
 0x4de   :  { %844 = vmatpush.msrb.mxu0 %v1732_v37  ;;  %819 = vmatpush.msrb.mxu3 %v1730_v36 }
 0x4e0   :  { %845 = vmatpush.msrb.mxu0 %v1738_v39  ;;  %820 = vmatpush.msrb.mxu3 %v1734_v38 }
 0x4e2   :  { %v342_v56 = vpop.permute.xlu2 %341  ;;  %846 = vmatpush.msrb.mxu0 %v1742_v41  ;;  %821 = vmatpush.msrb.mxu3 %v1740_v40 }
 0x4e3   :  { %1358 = vst.msk [vmem:[%s2033_s7] sm:$0x3] %vm1357_vm13, %v342_v56  ;;  %1392 = vmatmul.msk.f32.vlgmr.msrb.gmra.mxu2 %vm99_vm0, %v342_v56 }
 0x4e4   :  { %752 = vmatpush.msrb.mxu2 %v1684_v2  ;;  %847 = vmatpush.msrb.mxu0 %v1750_v43 }
 0x4e5   :  { %822 = vmatpush.msrb.mxu3 %v1748_v42 }
 0x4e6   :  { %753 = vmatpush.msrb.mxu2 %v1687_v3 }
 0x4e8   :  { %754 = vmatpush.msrb.mxu2 %v1692_v5 }
 0x4ea   :  { %755 = vmatpush.msrb.mxu2 %v1698_v7 }
 0x55a   :  { %v447_v58 = vpop.f32.mrf.mxu0 }
 0x55b   :  { %v451_v59 = vrot.slane %v447_v58, 4 }
 0x55d   :  { %v453_v60 = vadd.f32 %v451_v59, %v1721_v13 }
 0x55f   :  { %v1397_v61 = vmul.f32 -1.442695, %v453_v60 }
 0x560   :  { %v388_v62 = vpop.f32.mrf.mxu3 }
 0x561   :  { %1466 = vpow2.f32 %v1397_v61 }
 0x566   :  { %v362_v63 = vpop.f32.mrf.mxu2 }
 0x567   :  { %v1467_v0 = vpop.eup %1466  ;;  %v389_v1 = vadd.f32 %v388_v62, %v362_v63 }
 0x568   :  { %v457_v4 = vadd.f32 1.0, %v1467_v0 }
 0x569   :  { %v391_v6 = vadd.f32 %v1790_v52, %v389_v1 }
 0x56a   :  { %1468 = vrcp.f32 %v457_v4  ;;  %v469_v16 = vand.u32 2147483648, %v457_v4  ;;  %v467_v18 = vand.u32 2147483647, %v457_v4  ;;  %vm463_vm15 = vweird.f32 %v457_v4 }
 0x56b   :  { %v1394_v8 = vmul.f32 -1.442695, %v391_v6 }
 0x56c   :  { %v470_v20 = vor.u32 1.1754944e-38, %v469_v16  ;;  %vm468_vm2 = vcmp.eq.f32.partialorder %v467_v18, 8.507059e+37 }
 0x56d   :  { %1470 = vpow2.f32 %v1394_v8 }
 0x570   :  { %v1469_v9 = vpop.eup %1468 }
 0x571   :  { %v459_v11 = vmul.f32 %v1469_v9, %v457_v4  ;;  %vm464_vm14 = vweird.f32 %v1469_v9 }
 0x572   :  { %vm465_vm1 = vmor %vm463_vm15, %vm464_vm14 }
 0x573   :  { %v1471_v12 = vpop.eup %1470  ;;  %v460_v14 = vsub.f32 1.0, %v459_v11 }
 0x574   :  { %v395_v15 = vadd.f32 1.0, %v1471_v12 }
 0x575   :  { %v461_v17 = vmul.f32 %v1469_v9, %v460_v14 }
 0x576   :  { %1472 = vrcp.f32 %v395_v15  ;;  %v407_v28 = vand.u32 2147483648, %v395_v15  ;;  %v405_v30 = vand.u32 2147483647, %v395_v15  ;;  %vm401_vm4 = vweird.f32 %v395_v15 }
 0x577   :  { %v462_v19 = vadd.f32 %v1469_v9, %v461_v17 }
 0x578   :  { %v408_v32 = vor.u32 1.1754944e-38, %v407_v28  ;;  %vm406_vm6 = vcmp.eq.f32.partialorder %v405_v30, 8.507059e+37 }
 0x579   :  { %v466_v21 = vsel %vm465_vm1, %v1469_v9, %v462_v19 }
 0x57a   :  { %v471_v22 = vsel %vm468_vm2, %v470_v20, %v466_v21 }
 0x57b   :  { %v473_v23 = vmul.f32 2.0, %v471_v22  ;;  %v478_v53 = vmul.f32 %v476_v51, %v471_v22 }
 0x57c   :  { %v1473_v24 = vpop.eup %1472 }
 0x57d   :  { %v397_v25 = vmul.f32 %v1473_v24, %v395_v15  ;;  %v1398_v26 = vadd.f32 -1.0, %v473_v23  ;;  %vm402_vm3 = vweird.f32 %v1473_v24 }
 0x57e   :  { %vm403_vm5 = vmor %vm401_vm4, %vm402_vm3 }
 0x57f   :  { %v398_v27 = vsub.f32 1.0, %v397_v25  ;;  %480 = vrot.lane.b32.xlu0 %v1398_v26, %s1627_s3 }
 0x581   :  { %v399_v29 = vmul.f32 %v1473_v24, %v398_v27 }
 0x583   :  { %v400_v31 = vadd.f32 %v1473_v24, %v399_v29 }
 0x585   :  { %v404_v33 = vsel %vm403_vm5, %v1473_v24, %v400_v31 }
 0x586   :  { %v409_v44 = vsel %vm406_vm6, %v408_v32, %v404_v33 }
 0x587   :  { %v411_v45 = vmul.f32 2.0, %v409_v44  ;;  %v413_v58 = vmul.f32 %v409_v44, %v1801_v47 }
 0x589   :  { %v1395_v46 = vadd.f32 -1.0, %v411_v45 }
 0x58b   :  { %415 = vrot.lane.b32.xlu1 %v1395_v46, %s1627_s3 }
 0x5f1   :  { %v481_v48 = vpop.permute.xlu0 %480 }
 0x5f2   :  { %v483_v49 = vmul.f32 %v481_v48, %v471_v22 }
 0x5f4   :  { %485 = vrot.lane.b32.xlu2 %v483_v49, %s1628_s26 }
 0x5fd   :  { %v416_v34 = vpop.permute.xlu1 %415 }
 0x5fe   :  { %v418_v50 = vmul.f32 %v416_v34, %v409_v44 }
 0x600   :  { %420 = vrot.lane.b32.xlu0 %v418_v50, %s1628_s26 }
 0x64e   :  { %v486_v54 = vpop.permute.xlu2 %485 }
 0x64f   :  { %v1840_v55 = vadd.f32 %v486_v54, %v478_v53 }
 0x651   :  { %1474 = vtanh.f32 %v1840_v55 }
 0x657   :  { %v1475_v56 = vpop.eup %1474 }
 0x658   :  { %491 = vrot.lane.b32.xlu1 %v1475_v56, %s1627_s3 }
 0x672   :  { %v421_v59 = vpop.permute.xlu0 %420 }
 0x673   :  { %v1845_v60 = vadd.f32 %v421_v59, %v413_v58 }
 0x675   :  { %1476 = vtanh.f32 %v1845_v60 }
 0x67b   :  { %v1477_v61 = vpop.eup %1476 }
 0x67c   :  { %426 = vrot.lane.b32.xlu2 %v1477_v61, %s1627_s3 }
 0x6ca   :  { %v492_v35 = vpop.permute.xlu1 %491 }
 0x6cb   :  { %v494_v62 = vmul.f32 %v492_v35, %v471_v22 }
 0x6cd   :  { %v521_v63 = vrot.slane %v494_v62, 4  ;;  %v631_v62 = vrot.slane %v1840_v55, 6 }
 0x6cf   :  { %522 = vrot.lane.b32.xlu0 %v521_v63, %s1628_s26 }
 0x6d6   :  { %v427_v0 = vpop.permute.xlu2 %426 }
 0x6d7   :  { %v429_v1 = vmul.f32 %v427_v0, %v409_v44 }
 0x6d9   :  { %496 = vrot.lane.b32.xlu1 %v429_v1, %s1628_s26 }
 0x741   :  { %v523_v4 = vpop.permute.xlu0 %522 }
 0x742   :  { %1400 = vmatmul.msk.f32.vlgmr.msra.gmra.mxu2 %vm99_vm0, %v523_v4  ;;  %1403 = vmatmul.msk.f32.vlgmr.msra.gmra.mxu3 %vm99_vm0, %v523_v4 }
 0x743   :  { %999 = vmatpush.msra.mxu3 %v1732_v37  ;;  %973 = vmatpush.msra.mxu2 %v1730_v36 }
 0x745   :  { %1000 = vmatpush.msra.mxu3 %v1738_v39  ;;  %974 = vmatpush.msra.mxu2 %v1734_v38 }
 0x747   :  { %1001 = vmatpush.msra.mxu3 %v1742_v41  ;;  %975 = vmatpush.msra.mxu2 %v1740_v40 }
 0x749   :  { %1002 = vmatpush.msra.mxu3 %v1750_v43  ;;  %976 = vmatpush.msra.mxu2 %v1748_v42 }
 0x74b   :  { %v497_v47 = vpop.permute.xlu1 %496 }
 0x74c   :  { %1360 = vst.msk [vmem:[%s2033_s7 + $0x2] sm:$0x3] %vm1357_vm13, %v497_v47  ;;  %1399 = vmatmul.msk.f32.vlgmr.msra.gmra.mxu1 %vm99_vm0, %v497_v47 }
 0x74d   :  { %903 = vmatpush.msra.mxu1 %v1684_v2 }
 0x74f   :  { %904 = vmatpush.msra.mxu1 %v1687_v3 }
 0x751   :  { %905 = vmatpush.msra.mxu1 %v1692_v5 }
 0x753   :  { %906 = vmatpush.msra.mxu1 %v1698_v7 }
 0x7c5   :  { %v602_v6 = vpop.f32.mrf.mxu3  ;;  %v543_v11 = vpop.f32.mrf.mxu2 }
 0x7c6   :  { %v606_v8 = vrot.slane %v602_v6, 2 }
 0x7c8   :  { %v608_v9 = vadd.f32 %v606_v8, %v1721_v13 }
 0x7c9   :  { %v517_v12 = vpop.f32.mrf.mxu1 }
 0x7ca   :  { %v1404_v14 = vmul.f32 -1.442695, %v608_v9  ;;  %v544_v15 = vadd.f32 %v543_v11, %v517_v12 }
 0x7cc   :  { %1478 = vpow2.f32 %v1404_v14  ;;  %v546_v16 = vadd.f32 %v1790_v52, %v544_v15 }
 0x7ce   :  { %v1401_v17 = vmul.f32 -1.442695, %v546_v16 }
 0x7d0   :  { %1480 = vpow2.f32 %v1401_v17  ;;  %v1909_v17 = vadd.f32 %v1718_v10, %v1831_v57 }
 0x7d2   :  { %v1479_v18 = vpop.eup %1478 }
 0x7d3   :  { %v612_v19 = vadd.f32 1.0, %v1479_v18 }
 0x7d5   :  { %1482 = vrcp.f32 %v612_v19  ;;  %v622_v13 = vand.u32 2147483647, %v612_v19  ;;  %v624_v26 = vand.u32 2147483648, %v612_v19  ;;  %vm618_vm8 = vweird.f32 %v612_v19 }
 0x7d6   :  { %v1481_v20 = vpop.eup %1480 }
 0x7d7   :  { %v550_v21 = vadd.f32 1.0, %v1481_v20  ;;  %vm623_vm10 = vcmp.eq.f32.partialorder %v622_v13, 8.507059e+37  ;;  %v625_v31 = vor.u32 1.1754944e-38, %v624_v26 }
 0x7d9   :  { %1484 = vrcp.f32 %v550_v21  ;;  %v562_v32 = vand.u32 2147483648, %v550_v21  ;;  %v560_v45 = vand.u32 2147483647, %v550_v21  ;;  %vm556_vm12 = vweird.f32 %v550_v21 }
 0x7db   :  { %v1483_v22 = vpop.eup %1482  ;;  %v563_v34 = vor.u32 1.1754944e-38, %v562_v32  ;;  %vm561_vm15 = vcmp.eq.f32.partialorder %v560_v45, 8.507059e+37 }
 0x7dc   :  { %v614_v23 = vmul.f32 %v1483_v22, %v612_v19  ;;  %vm619_vm7 = vweird.f32 %v1483_v22 }
 0x7dd   :  { %vm620_vm9 = vmor %vm618_vm8, %vm619_vm7 }
 0x7de   :  { %v615_v24 = vsub.f32 1.0, %v614_v23 }
 0x7df   :  { %v1485_v25 = vpop.eup %1484 }
 0x7e0   :  { %v552_v27 = vmul.f32 %v1485_v25, %v550_v21  ;;  %v616_v28 = vmul.f32 %v1483_v22, %v615_v24  ;;  %vm557_vm11 = vweird.f32 %v1485_v25 }
 0x7e1   :  { %vm558_vm14 = vmor %vm556_vm12, %vm557_vm11 }
 0x7e2   :  { %v553_v29 = vsub.f32 1.0, %v552_v27  ;;  %v617_v30 = vadd.f32 %v1483_v22, %v616_v28 }
 0x7e4   :  { %v621_v33 = vsel %vm620_vm9, %v1483_v22, %v617_v30  ;;  %v554_v44 = vmul.f32 %v1485_v25, %v553_v29 }
 0x7e5   :  { %v626_v46 = vsel %vm623_vm10, %v625_v31, %v621_v33 }
 0x7e6   :  { %v628_v48 = vmul.f32 2.0, %v626_v46  ;;  %v555_v49 = vadd.f32 %v1485_v25, %v554_v44  ;;  %v633_v63 = vmul.f32 %v631_v62, %v626_v46 }
 0x7e8   :  { %v1405_v50 = vadd.f32 -1.0, %v628_v48  ;;  %v559_v51 = vsel %vm558_vm14, %v1485_v25, %v555_v49 }
 0x7e9   :  { %v564_v53 = vsel %vm561_vm15, %v563_v34, %v559_v51 }
 0x7ea   :  { %635 = vrot.lane.b32.xlu2 %v1405_v50, %s1627_s3  ;;  %v566_v54 = vmul.f32 2.0, %v564_v53  ;;  %v568_v4 = vmul.f32 %v564_v53, %v1845_v60 }
 0x7ec   :  { %v1402_v56 = vadd.f32 -1.0, %v566_v54 }
 0x7ee   :  { %570 = vrot.lane.b32.xlu0 %v1402_v56, %s1627_s3 }
 0x844   :  { %v636_v58 = vpop.permute.xlu2 %635 }
 0x845   :  { %v638_v59 = vmul.f32 %v636_v58, %v626_v46 }
 0x847   :  { %640 = vrot.lane.b32.xlu1 %v638_v59, %s1628_s26 }
 0x860   :  { %v571_v61 = vpop.permute.xlu0 %570 }
 0x861   :  { %v573_v35 = vmul.f32 %v571_v61, %v564_v53 }
 0x863   :  { %575 = vrot.lane.b32.xlu2 %v573_v35, %s1628_s26 }
 0x8b9   :  { %v641_v0 = vpop.permute.xlu1 %640 }
 0x8ba   :  { %v1877_v1 = vadd.f32 %v641_v0, %v633_v63 }
 0x8bc   :  { %1486 = vtanh.f32 %v1877_v1 }
 0x8bd   :  { %v576_v47 = vpop.permute.xlu2 %575 }
 0x8be   :  { %v1881_v6 = vadd.f32 %v576_v47, %v568_v4 }
 0x8c0   :  { %1488 = vtanh.f32 %v1881_v6 }
 0x8c2   :  { %v1487_v8 = vpop.eup %1486 }
 0x8c3   :  { %646 = vrot.lane.b32.xlu0 %v1487_v8, %s1627_s3 }
 0x8c6   :  { %v1489_v9 = vpop.eup %1488 }
 0x8c7   :  { %581 = vrot.lane.b32.xlu1 %v1489_v9, %s1627_s3  ;;  %v783_v9 = vrot.slane %v1877_v1, 6 }
 0x935   :  { %v647_v55 = vpop.permute.xlu0 %646 }
 0x936   :  { %v649_v11 = vmul.f32 %v647_v55, %v626_v46 }
 0x938   :  { %v676_v12 = vrot.slane %v649_v11, 6 }
 0x939   :  { %v582_v14 = vpop.permute.xlu1 %581 }
 0x93a   :  { %v584_v15 = vmul.f32 %v582_v14, %v564_v53  ;;  %677 = vrot.lane.b32.xlu2 %v676_v12, %s1628_s26 }
 0x93c   :  { %651 = vrot.lane.b32.xlu0 %v584_v15, %s1628_s26 }
 0x994   :  { %v678_v60 = vpop.permute.xlu2 %677 }
 0x995   :  { %1407 = vmatmul.msk.f32.vlgmr.msrb.gmra.mxu1 %vm99_vm0, %v678_v60  ;;  %1410 = vmatmul.msk.f32.vlgmr.msrb.gmra.mxu2 %vm99_vm0, %v678_v60 }
 0x996   :  { %1154 = vmatpush.msrb.mxu2 %v1732_v37  ;;  %1128 = vmatpush.msrb.mxu1 %v1730_v36 }
 0x998   :  { %1155 = vmatpush.msrb.mxu2 %v1738_v39  ;;  %1129 = vmatpush.msrb.mxu1 %v1734_v38 }
 0x99a   :  { %1156 = vmatpush.msrb.mxu2 %v1742_v41  ;;  %1130 = vmatpush.msrb.mxu1 %v1740_v40 }
 0x99c   :  { %1157 = vmatpush.msrb.mxu2 %v1750_v43  ;;  %1131 = vmatpush.msrb.mxu1 %v1748_v42 }
 0x9ae   :  { %v652_v16 = vpop.permute.xlu0 %651 }
 0x9af   :  { %1362 = vst.msk [vmem:[%s2033_s7 + $0x4] sm:$0x3] %vm1357_vm13, %v652_v16  ;;  %1406 = vmatmul.msk.f32.vlgmr.msra.gmra.mxu0 %vm99_vm0, %v652_v16 }
 0x9b0   :  { %1058 = vmatpush.msra.mxu0 %v1684_v2 }
 0x9b2   :  { %1059 = vmatpush.msra.mxu0 %v1687_v3 }
 0x9b4   :  { %1060 = vmatpush.msra.mxu0 %v1692_v5 }
 0x9b6   :  { %1061 = vmatpush.msra.mxu0 %v1698_v7 }
 0xa12   :  { %v698_v24 = vpop.f32.mrf.mxu1 }
 0xa18   :  { %v757_v18 = vpop.f32.mrf.mxu2 }
 0xa19   :  { %v760_v19 = vadd.f32 %v757_v18, %v1909_v17 }
 0xa1b   :  { %v1411_v20 = vmul.f32 -1.442695, %v760_v19 }
 0xa1d   :  { %1490 = vpow2.f32 %v1411_v20 }
 0xa23   :  { %v1491_v21 = vpop.eup %1490 }
 0xa24   :  { %v764_v22 = vadd.f32 1.0, %v1491_v21 }
 0xa26   :  { %1492 = vrcp.f32 %v764_v22  ;;  %v776_v29 = vand.u32 2147483648, %v764_v22  ;;  %v774_v57 = vand.u32 2147483647, %v764_v22  ;;  %vm770_vm2 = vweird.f32 %v764_v22 }
 0xa28   :  { %v777_v32 = vor.u32 1.1754944e-38, %v776_v29  ;;  %vm775_vm4 = vcmp.eq.f32.partialorder %v774_v57, 8.507059e+37 }
 0xa2c   :  { %v1493_v23 = vpop.eup %1492  ;;  %v672_v25 = vpop.f32.mrf.mxu0 }
 0xa2d   :  { %v766_v13 = vmul.f32 %v1493_v23, %v764_v22  ;;  %v699_v26 = vadd.f32 %v698_v24, %v672_v25  ;;  %vm771_vm1 = vweird.f32 %v1493_v23 }
 0xa2e   :  { %vm772_vm3 = vmor %vm770_vm2, %vm771_vm1 }
 0xa2f   :  { %v767_v27 = vsub.f32 1.0, %v766_v13  ;;  %v701_v28 = vadd.f32 %v1790_v52, %v699_v26 }
 0xa31   :  { %v1408_v30 = vmul.f32 -1.442695, %v701_v28  ;;  %v768_v10 = vmul.f32 %v1493_v23, %v767_v27 }
 0xa33   :  { %1494 = vpow2.f32 %v1408_v30  ;;  %v769_v31 = vadd.f32 %v1493_v23, %v768_v10 }
 0xa35   :  { %v773_v33 = vsel %vm772_vm3, %v1493_v23, %v769_v31 }
 0xa36   :  { %v778_v44 = vsel %vm775_vm4, %v777_v32, %v773_v33 }
 0xa37   :  { %v780_v45 = vmul.f32 2.0, %v778_v44  ;;  %v785_v55 = vmul.f32 %v783_v9, %v778_v44 }
 0xa39   :  { %v1495_v46 = vpop.eup %1494  ;;  %v1412_v48 = vadd.f32 -1.0, %v780_v45 }
 0xa3a   :  { %v705_v49 = vadd.f32 1.0, %v1495_v46 }
 0xa3b   :  { %787 = vrot.lane.b32.xlu2 %v1412_v48, %s1627_s3 }
 0xa3c   :  { %1496 = vrcp.f32 %v705_v49  ;;  %v717_v53 = vand.u32 2147483648, %v705_v49  ;;  %v715_v56 = vand.u32 2147483647, %v705_v49  ;;  %vm711_vm6 = vweird.f32 %v705_v49 }
 0xa3e   :  { %v718_v59 = vor.u32 1.1754944e-38, %v717_v53  ;;  %vm716_vm8 = vcmp.eq.f32.partialorder %v715_v56, 8.507059e+37 }
 0xa42   :  { %v1497_v34 = vpop.eup %1496 }
 0xa43   :  { %v707_v50 = vmul.f32 %v1497_v34, %v705_v49  ;;  %vm712_vm5 = vweird.f32 %v1497_v34 }
 0xa44   :  { %vm713_vm7 = vmor %vm711_vm6, %vm712_vm5 }
 0xa45   :  { %v708_v51 = vsub.f32 1.0, %v707_v50 }
 0xa47   :  { %v709_v54 = vmul.f32 %v1497_v34, %v708_v51 }
 0xa49   :  { %v710_v58 = vadd.f32 %v1497_v34, %v709_v54 }
 0xa4b   :  { %v714_v61 = vsel %vm713_vm7, %v1497_v34, %v710_v58 }
 0xa4c   :  { %v719_v35 = vsel %vm716_vm8, %v718_v59, %v714_v61 }
 0xa4d   :  { %v721_v62 = vmul.f32 2.0, %v719_v35  ;;  %v723_v15 = vmul.f32 %v719_v35, %v1881_v6 }
 0xa4f   :  { %v1409_v63 = vadd.f32 -1.0, %v721_v62 }
 0xa51   :  { %725 = vrot.lane.b32.xlu1 %v1409_v63, %s1627_s3 }
 0xa95   :  { %v788_v0 = vpop.permute.xlu2 %787 }
 0xa96   :  { %v790_v4 = vmul.f32 %v788_v0, %v778_v44 }
 0xa98   :  { %792 = vrot.lane.b32.xlu1 %v790_v4, %s1628_s26 }
 0xac3   :  { %v726_v47 = vpop.permute.xlu1 %725 }
 0xac4   :  { %v728_v8 = vmul.f32 %v726_v47, %v719_v35 }
 0xac6   :  { %730 = vrot.lane.b32.xlu0 %v728_v8, %s1628_s26 }
 0xb0a   :  { %v793_v11 = vpop.permute.xlu1 %792 }
 0xb0b   :  { %v1918_v12 = vadd.f32 %v793_v11, %v785_v55 }
 0xb0d   :  { %1498 = vtanh.f32 %v1918_v12  ;;  %v937_v62 = vrot.slane %v1918_v12, 6 }
 0xb13   :  { %v1499_v14 = vpop.eup %1498 }
 0xb14   :  { %798 = vrot.lane.b32.xlu0 %v1499_v14, %s1627_s3 }
 0xb38   :  { %v731_v60 = vpop.permute.xlu0 %730 }
 0xb39   :  { %v1923_v16 = vadd.f32 %v731_v60, %v723_v15 }
 0xb3b   :  { %1500 = vtanh.f32 %v1923_v16 }
 0xb41   :  { %v1501_v18 = vpop.eup %1500 }
 0xb42   :  { %736 = vrot.lane.b32.xlu2 %v1501_v18, %s1627_s3 }
 0xb86   :  { %v799_v1 = vpop.permute.xlu0 %798 }
 0xb87   :  { %v801_v19 = vmul.f32 %v799_v1, %v778_v44 }
 0xb89   :  { %828 = vrot.lane.b32.xlu2 %v801_v19, %s1628_s26 }
 0xb9c   :  { %v737_v20 = vpop.permute.xlu2 %736 }
 0xb9d   :  { %v739_v21 = vmul.f32 %v737_v20, %v719_v35 }
 0xb9f   :  { %803 = vrot.lane.b32.xlu1 %v739_v21, %s1628_s26 }
 0xbe3   :  { %v829_v22 = vpop.permute.xlu2 %828 }
 0xbe4   :  { %1414 = vmatmul.msk.f32.vlgmr.msrb.gmra.mxu0 %vm99_vm0, %v829_v22  ;;  %1417 = vmatmul.msk.f32.vlgmr.msra.gmra.mxu1 %vm99_vm0, %v829_v22 }
 0xbe5   :  { %1309 = vmatpush.msra.mxu1 %v1732_v37  ;;  %1283 = vmatpush.msrb.mxu0 %v1730_v36 }
 0xbe7   :  { %1310 = vmatpush.msra.mxu1 %v1738_v39  ;;  %1284 = vmatpush.msrb.mxu0 %v1734_v38 }
 0xbe9   :  { %1311 = vmatpush.msra.mxu1 %v1742_v41  ;;  %1285 = vmatpush.msrb.mxu0 %v1740_v40 }
 0xbeb   :  { %1312 = vmatpush.msra.mxu1 %v1750_v43  ;;  %1286 = vmatpush.msrb.mxu0 %v1748_v42 }
 0xc11   :  { %v804_v6 = vpop.permute.xlu1 %803 }
 0xc12   :  { %1364 = vst.msk [vmem:[%s2033_s7 + $0x6] sm:$0x3] %vm1357_vm13, %v804_v6  ;;  %1413 = vmatmul.msk.f32.vlgmr.msrb.gmra.mxu3 %vm99_vm0, %v804_v6 }
 0xc13   :  { %1213 = vmatpush.msrb.mxu3 %v1684_v2 }
 0xc15   :  { %1214 = vmatpush.msrb.mxu3 %v1687_v3 }
 0xc17   :  { %1215 = vmatpush.msrb.mxu3 %v1692_v5 }
 0xc19   :  { %1216 = vmatpush.msrb.mxu3 %v1698_v7 }
 0xc61   :  { %v908_v36 = vpop.f32.mrf.mxu1  ;;  %v849_v28 = vpop.f32.mrf.mxu0 }
 0xc62   :  { %v912_v37 = vrot.slane %v908_v36, 6 }
 0xc64   :  { %v914_v38 = vadd.f32 %v912_v37, %v1909_v17 }
 0xc66   :  { %v1418_v39 = vmul.f32 -1.442695, %v914_v38 }
 0xc68   :  { %1502 = vpow2.f32 %v1418_v39 }
 0xc6e   :  { %v1503_v40 = vpop.eup %1502 }
 0xc6f   :  { %v918_v41 = vadd.f32 1.0, %v1503_v40 }
 0xc71   :  { %1504 = vrcp.f32 %v918_v41  ;;  %v930_v24 = vand.u32 2147483648, %v918_v41  ;;  %v928_v3 = vand.u32 2147483647, %v918_v41  ;;  %vm924_vm10 = vweird.f32 %v918_v41 }
 0xc73   :  { %v931_v5 = vor.u32 1.1754944e-38, %v930_v24  ;;  %vm929_vm12 = vcmp.eq.f32.partialorder %v928_v3, 8.507059e+37 }
 0xc77   :  { %v1505_v42 = vpop.eup %1504 }
 0xc78   :  { %v920_v43 = vmul.f32 %v1505_v42, %v918_v41  ;;  %vm925_vm9 = vweird.f32 %v1505_v42 }
 0xc79   :  { %vm926_vm11 = vmor %vm924_vm10, %vm925_vm9 }
 0xc7a   :  { %v921_v23 = vsub.f32 1.0, %v920_v43 }
 0xc7c   :  { %v922_v2 = vmul.f32 %v1505_v42, %v921_v23 }
 0xc7e   :  { %v923_v25 = vadd.f32 %v1505_v42, %v922_v2 }
 0xc80   :  { %v927_v7 = vsel %vm926_vm11, %v1505_v42, %v923_v25 }
 0xc81   :  { %v932_v13 = vsel %vm929_vm12, %v931_v5, %v927_v7 }
 0xc82   :  { %v934_v26 = vmul.f32 2.0, %v932_v13  ;;  %v939_v63 = vmul.f32 %v937_v62, %v932_v13 }
 0xc84   :  { %v1419_v27 = vadd.f32 -1.0, %v934_v26 }
 0xc86   :  { %941 = vrot.lane.b32.xlu0 %v1419_v27, %s1627_s3 }
 0xc95   :  { %v824_v29 = vpop.f32.mrf.mxu3 }
 0xc96   :  { %v850_v30 = vadd.f32 %v849_v28, %v824_v29 }
 0xc98   :  { %v852_v10 = vadd.f32 %v1790_v52, %v850_v30 }
 0xc9a   :  { %v1415_v57 = vmul.f32 -1.442695, %v852_v10 }
 0xc9c   :  { %1506 = vpow2.f32 %v1415_v57 }
 0xca2   :  { %v1507_v31 = vpop.eup %1506 }
 0xca3   :  { %v856_v32 = vadd.f32 1.0, %v1507_v31 }
 0xca5   :  { %1508 = vrcp.f32 %v856_v32  ;;  %v868_v46 = vand.u32 2147483648, %v856_v32  ;;  %v866_v49 = vand.u32 2147483647, %v856_v32  ;;  %vm862_vm15 = vweird.f32 %v856_v32 }
 0xca7   :  { %v869_v50 = vor.u32 1.1754944e-38, %v868_v46  ;;  %vm867_vm2 = vcmp.eq.f32.partialorder %v866_v49, 8.507059e+37 }
 0xcab   :  { %v1509_v33 = vpop.eup %1508 }
 0xcac   :  { %v858_v44 = vmul.f32 %v1509_v33, %v856_v32  ;;  %vm863_vm14 = vweird.f32 %v1509_v33 }
 0xcad   :  { %vm864_vm1 = vmor %vm862_vm15, %vm863_vm14 }
 0xcae   :  { %v859_v45 = vsub.f32 1.0, %v858_v44 }
 0xcb0   :  { %v860_v48 = vmul.f32 %v1509_v33, %v859_v45 }
 0xcb2   :  { %v861_v34 = vadd.f32 %v1509_v33, %v860_v48 }
 0xcb4   :  { %v865_v51 = vsel %vm864_vm1, %v1509_v33, %v861_v34 }
 0xcb5   :  { %v870_v53 = vsel %vm867_vm2, %v869_v50, %v865_v51 }
 0xcb6   :  { %v872_v54 = vmul.f32 2.0, %v870_v53  ;;  %v874_v8 = vmul.f32 %v870_v53, %v1923_v16 }
 0xcb8   :  { %v1416_v56 = vadd.f32 -1.0, %v872_v54 }
 0xcba   :  { %876 = vrot.lane.b32.xlu1 %v1416_v56, %s1627_s3 }
 0xcf8   :  { %v942_v58 = vpop.permute.xlu0 %941 }
 0xcf9   :  { %v944_v59 = vmul.f32 %v942_v58, %v932_v13 }
 0xcfb   :  { %946 = vrot.lane.b32.xlu2 %v944_v59, %s1628_s26 }
 0xd2c   :  { %v877_v61 = vpop.permute.xlu1 %876 }
 0xd2d   :  { %v879_v35 = vmul.f32 %v877_v61, %v870_v53 }
 0xd2f   :  { %881 = vrot.lane.b32.xlu0 %v879_v35, %s1628_s26 }
 0xd55   :  { %v947_v0 = vpop.permute.xlu2 %946 }
 0xd56   :  { %v1955_v4 = vadd.f32 %v947_v0, %v939_v63 }
 0xd58   :  { %1510 = vtanh.f32 %v1955_v4  ;;  %v1092_v54 = vrot.slane %v1955_v4, 6 }
 0xd5e   :  { %v1511_v47 = vpop.eup %1510 }
 0xd5f   :  { %952 = vrot.lane.b32.xlu1 %v1511_v47, %s1627_s3 }
 0xda1   :  { %v882_v9 = vpop.permute.xlu0 %881 }
 0xda2   :  { %v1960_v55 = vadd.f32 %v882_v9, %v874_v8 }
 0xda4   :  { %1512 = vtanh.f32 %v1960_v55 }
 0xdaa   :  { %v1513_v11 = vpop.eup %1512 }
 0xdab   :  { %887 = vrot.lane.b32.xlu2 %v1513_v11, %s1627_s3 }
 0xdd1   :  { %v953_v12 = vpop.permute.xlu1 %952 }
 0xdd2   :  { %v955_v14 = vmul.f32 %v953_v12, %v932_v13 }
 0xdd4   :  { %v982_v15 = vrot.slane %v955_v14, 2 }
 0xdd6   :  { %983 = vrot.lane.b32.xlu0 %v982_v15, %s1628_s26 }
 0xe05   :  { %v888_v60 = vpop.permute.xlu2 %887 }
 0xe06   :  { %v890_v18 = vmul.f32 %v888_v60, %v870_v53 }
 0xe08   :  { %957 = vrot.lane.b32.xlu1 %v890_v18, %s1628_s26 }
 0xe48   :  { %v984_v1 = vpop.permute.xlu0 %983 }
 0xe49   :  { %1421 = vmatmul.msk.f32.vlgmr.msra.gmra.mxu3 %vm99_vm0, %v984_v1  ;;  %1424 = vmatmul.msk.f32.vlgmr.msra.gmra.mxu0 %vm99_vm0, %v984_v1 }
 0xe7a   :  { %v958_v16 = vpop.permute.xlu1 %957 }
 0xe7b   :  { %1366 = vst.msk [vmem:[%s2033_s7 + $0x8] sm:$0x3] %vm1357_vm13, %v958_v16  ;;  %1420 = vmatmul.msk.f32.vlgmr.msra.gmra.mxu2 %vm99_vm0, %v958_v16 }
 0xec6   :  { %v1063_v19 = vpop.f32.mrf.mxu0 }
 0xec7   :  { %v1067_v20 = vrot.slane %v1063_v19, 4 }
 0xec9   :  { %v1069_v21 = vadd.f32 %v1067_v20, %v1909_v17 }
 0xecb   :  { %v1425_v22 = vmul.f32 -1.442695, %v1069_v21 }
 0xecc   :  { %v1004_v5 = vpop.f32.mrf.mxu3 }
 0xecd   :  { %1514 = vpow2.f32 %v1425_v22 }
 0xed3   :  { %v1515_v6 = vpop.eup %1514 }
 0xed4   :  { %v1073_v36 = vadd.f32 1.0, %v1515_v6 }
 0xed6   :  { %1516 = vrcp.f32 %v1073_v36  ;;  %v1085_v40 = vand.u32 2147483648, %v1073_v36  ;;  %v1083_v42 = vand.u32 2147483647, %v1073_v36  ;;  %vm1079_vm4 = vweird.f32 %v1073_v36 }
 0xed8   :  { %v1086_v23 = vor.u32 1.1754944e-38, %v1085_v40  ;;  %vm1084_vm6 = vcmp.eq.f32.partialorder %v1083_v42, 8.507059e+37 }
 0xedc   :  { %v1517_v37 = vpop.eup %1516 }
 0xedd   :  { %v1075_v38 = vmul.f32 %v1517_v37, %v1073_v36  ;;  %vm1080_vm3 = vweird.f32 %v1517_v37 }
 0xede   :  { %vm1081_vm5 = vmor %vm1079_vm4, %vm1080_vm3 }
 0xedf   :  { %v1076_v39 = vsub.f32 1.0, %v1075_v38 }
 0xee1   :  { %v1077_v41 = vmul.f32 %v1517_v37, %v1076_v39 }
 0xee3   :  { %v1078_v43 = vadd.f32 %v1517_v37, %v1077_v41 }
 0xee5   :  { %v1082_v24 = vsel %vm1081_vm5, %v1517_v37, %v1078_v43 }
 0xee6   :  { %v1087_v2 = vsel %vm1084_vm6, %v1086_v23, %v1082_v24  ;;  %v1544_v24 = vld [vmem:[%s2032_s6] ss:$0 sm:$0xff] }
 0xee7   :  { %v1089_v3 = vmul.f32 2.0, %v1087_v2  ;;  %v1094_v56 = vmul.f32 %v1092_v54, %v1087_v2 }
 0xee9   :  { %v1426_v25 = vadd.f32 -1.0, %v1089_v3 }
 0xeeb   :  { %1096 = vrot.lane.b32.xlu2 %v1426_v25, %s1627_s3 }
 0xefe   :  { %v978_v7 = vpop.f32.mrf.mxu2 }
 0xeff   :  { %v1005_v13 = vadd.f32 %v1004_v5, %v978_v7 }
 0xf01   :  { %v1007_v26 = vadd.f32 %v1790_v52, %v1005_v13 }
 0xf03   :  { %v1422_v27 = vmul.f32 -1.442695, %v1007_v26 }
 0xf05   :  { %1518 = vpow2.f32 %v1422_v27 }
 0xf0b   :  { %v1519_v28 = vpop.eup %1518 }
 0xf0c   :  { %v1011_v29 = vadd.f32 1.0, %v1519_v28 }
 0xf0e   :  { %1520 = vrcp.f32 %v1011_v29  ;;  %v1023_v31 = vand.u32 2147483648, %v1011_v29  ;;  %v1021_v33 = vand.u32 2147483647, %v1011_v29  ;;  %vm1017_vm8 = vweird.f32 %v1011_v29 }
 0xf10   :  { %v1024_v45 = vor.u32 1.1754944e-38, %v1023_v31  ;;  %vm1022_vm10 = vcmp.eq.f32.partialorder %v1021_v33, 8.507059e+37 }
 0xf14   :  { %v1521_v30 = vpop.eup %1520 }
 0xf15   :  { %v1013_v10 = vmul.f32 %v1521_v30, %v1011_v29  ;;  %vm1018_vm7 = vweird.f32 %v1521_v30 }
 0xf16   :  { %vm1019_vm9 = vmor %vm1017_vm8, %vm1018_vm7 }
 0xf17   :  { %v1014_v57 = vsub.f32 1.0, %v1013_v10 }
 0xf19   :  { %v1015_v32 = vmul.f32 %v1521_v30, %v1014_v57 }
 0xf1b   :  { %v1016_v44 = vadd.f32 %v1521_v30, %v1015_v32 }
 0xf1d   :  { %v1020_v46 = vsel %vm1019_vm9, %v1521_v30, %v1016_v44 }
 0xf1e   :  { %v1025_v48 = vsel %vm1022_vm10, %v1024_v45, %v1020_v46 }
 0xf1f   :  { %v1027_v52 = vmul.f32 2.0, %v1025_v48  ;;  %v1029_v35 = vmul.f32 %v1025_v48, %v1960_v55 }
 0xf21   :  { %v1423_v49 = vadd.f32 -1.0, %v1027_v52 }
 0xf23   :  { %1031 = vrot.lane.b32.xlu0 %v1423_v49, %s1627_s3 }
 0xf45   :  { %v1097_v34 = vpop.permute.xlu2 %1096 }
 0xf46   :  { %v1099_v50 = vmul.f32 %v1097_v34, %v1087_v2 }
 0xf48   :  { %1101 = vrot.lane.b32.xlu1 %v1099_v50, %s1628_s26 }
 0xf95   :  { %v1032_v51 = vpop.permute.xlu0 %1031 }
 0xf96   :  { %v1034_v53 = vmul.f32 %v1032_v51, %v1025_v48 }
 0xf98   :  { %1036 = vrot.lane.b32.xlu2 %v1034_v53, %s1628_s26 }
 0xfba   :  { %v1102_v58 = vpop.permute.xlu1 %1101 }
 0xfbb   :  { %v1980_v59 = vadd.f32 %v1102_v58, %v1094_v56 }
 0xfbd   :  { %1522 = vtanh.f32 %v1980_v59  ;;  %v1247_v52 = vrot.slane %v1980_v59, 6 }
 0xfc3   :  { %v1523_v61 = vpop.eup %1522 }
 0xfc4   :  { %1107 = vrot.lane.b32.xlu0 %v1523_v61, %s1627_s3 }
 0xff2   :  { %v1037_v62 = vpop.permute.xlu2 %1036 }
 0xff3   :  { %v1985_v63 = vadd.f32 %v1037_v62, %v1029_v35 }
 0xff5   :  { %1524 = vtanh.f32 %v1985_v63 }
 0xffb   :  { %v1525_v0 = vpop.eup %1524 }
 0xffc   :  { %1042 = vrot.lane.b32.xlu1 %v1525_v0, %s1627_s3 }
0x1036   :  { %v1108_v4 = vpop.permute.xlu0 %1107 }
0x1037   :  { %v1110_v47 = vmul.f32 %v1108_v4, %v1087_v2 }
0x1039   :  { %v1137_v8 = vrot.slane %v1110_v47, 4 }
0x103b   :  { %1138 = vrot.lane.b32.xlu2 %v1137_v8, %s1628_s26 }
0x106e   :  { %v1043_v9 = vpop.permute.xlu1 %1042 }
0x106f   :  { %v1045_v11 = vmul.f32 %v1043_v9, %v1025_v48 }
0x1071   :  { %1112 = vrot.lane.b32.xlu0 %v1045_v11, %s1628_s26 }
0x1095   :  { %v1139_v12 = vpop.permute.xlu2 %1138 }
0x1096   :  { %1428 = vmatmul.msk.f32.vlgmr.msrb.gmra.mxu2 %vm99_vm0, %v1139_v12  ;;  %1431 = vmatmul.msk.f32.vlgmr.msrb.gmra.mxu3 %vm99_vm0, %v1139_v12 }
0x10e3   :  { %v1113_v55 = vpop.permute.xlu0 %1112 }
0x10e4   :  { %1368 = vst.msk [vmem:[%s2033_s7 + $0xa] sm:$0x3] %vm1357_vm13, %v1113_v55  ;;  %1427 = vmatmul.msk.f32.vlgmr.msrb.gmra.mxu1 %vm99_vm0, %v1113_v55 }
0x1119   :  { %v1218_v14 = vpop.f32.mrf.mxu3  ;;  %v1159_v42 = vpop.f32.mrf.mxu2 }
0x111a   :  { %v1222_v15 = vrot.slane %v1218_v14, 2 }
0x111c   :  { %v1224_v60 = vadd.f32 %v1222_v15, %v1909_v17 }
0x111e   :  { %v1432_v18 = vmul.f32 -1.442695, %v1224_v60 }
0x1120   :  { %1526 = vpow2.f32 %v1432_v18 }
0x1126   :  { %v1527_v1 = vpop.eup %1526 }
0x1127   :  { %v1228_v16 = vadd.f32 1.0, %v1527_v1 }
0x1129   :  { %1528 = vrcp.f32 %v1228_v16  ;;  %v1240_v22 = vand.u32 2147483648, %v1228_v16  ;;  %v1238_v36 = vand.u32 2147483647, %v1228_v16  ;;  %vm1234_vm12 = vweird.f32 %v1228_v16 }
0x112b   :  { %v1241_v38 = vor.u32 1.1754944e-38, %v1240_v22  ;;  %vm1239_vm15 = vcmp.eq.f32.partialorder %v1238_v36, 8.507059e+37 }
0x112f   :  { %v1529_v19 = vpop.eup %1528 }
0x1130   :  { %v1230_v20 = vmul.f32 %v1529_v19, %v1228_v16  ;;  %vm1235_vm11 = vweird.f32 %v1529_v19 }
0x1131   :  { %vm1236_vm14 = vmor %vm1234_vm12, %vm1235_vm11 }
0x1132   :  { %v1231_v21 = vsub.f32 1.0, %v1230_v20 }
0x1134   :  { %v1232_v6 = vmul.f32 %v1529_v19, %v1231_v21 }
0x1136   :  { %v1233_v37 = vadd.f32 %v1529_v19, %v1232_v6 }
0x1138   :  { %v1237_v39 = vsel %vm1236_vm14, %v1529_v19, %v1233_v37 }
0x1139   :  { %v1242_v40 = vsel %vm1239_vm15, %v1241_v38, %v1237_v39 }
0x113a   :  { %v1244_v17 = vmul.f32 2.0, %v1242_v40  ;;  %v1249_v49 = vmul.f32 %v1247_v52, %v1242_v40 }
0x113c   :  { %v1433_v41 = vadd.f32 -1.0, %v1244_v17 }
0x113e   :  { %1251 = vrot.lane.b32.xlu1 %v1433_v41, %s1627_s3 }
0x1161   :  { %v1133_v43 = vpop.f32.mrf.mxu1 }
0x1162   :  { %v1160_v23 = vadd.f32 %v1159_v42, %v1133_v43 }
0x1164   :  { %v1162_v2 = vadd.f32 %v1544_v24, %v1160_v23 }
0x1166   :  { %v1429_v3 = vmul.f32 -1.442695, %v1162_v2 }
0x1168   :  { %1530 = vpow2.f32 %v1429_v3 }
0x116e   :  { %v1531_v25 = vpop.eup %1530 }
0x116f   :  { %v1166_v5 = vadd.f32 1.0, %v1531_v25 }
0x1171   :  { %1532 = vrcp.f32 %v1166_v5  ;;  %v1178_v27 = vand.u32 2147483648, %v1166_v5  ;;  %v1176_v29 = vand.u32 2147483647, %v1166_v5  ;;  %vm1172_vm2 = vweird.f32 %v1166_v5 }
0x1173   :  { %v1179_v10 = vor.u32 1.1754944e-38, %v1178_v27  ;;  %vm1177_vm4 = vcmp.eq.f32.partialorder %v1176_v29, 8.507059e+37 }
0x1177   :  { %v1533_v7 = vpop.eup %1532 }
0x1178   :  { %v1168_v13 = vmul.f32 %v1533_v7, %v1166_v5  ;;  %vm1173_vm1 = vweird.f32 %v1533_v7 }
0x1179   :  { %vm1174_vm3 = vmor %vm1172_vm2, %vm1173_vm1 }
0x117a   :  { %v1169_v26 = vsub.f32 1.0, %v1168_v13 }
0x117c   :  { %v1170_v28 = vmul.f32 %v1533_v7, %v1169_v26 }
0x117e   :  { %v1171_v30 = vadd.f32 %v1533_v7, %v1170_v28 }
0x1180   :  { %v1175_v57 = vsel %vm1174_vm3, %v1533_v7, %v1171_v30 }
0x1181   :  { %v1180_v31 = vsel %vm1177_vm4, %v1179_v10, %v1175_v57 }
0x1182   :  { %v1182_v32 = vmul.f32 2.0, %v1180_v31  ;;  %v1184_v53 = vmul.f32 %v1180_v31, %v1985_v63 }
0x1184   :  { %v1430_v33 = vadd.f32 -1.0, %v1182_v32 }
0x1186   :  { %1186 = vrot.lane.b32.xlu2 %v1430_v33, %s1627_s3 }
0x11b0   :  { %v1252_v44 = vpop.permute.xlu1 %1251 }
0x11b1   :  { %v1254_v45 = vmul.f32 %v1252_v44, %v1242_v40 }
0x11b3   :  { %1256 = vrot.lane.b32.xlu0 %v1254_v45, %s1628_s26 }
0x11e0   :  { %v1187_v46 = vpop.permute.xlu2 %1186 }
0x11e1   :  { %v1189_v48 = vmul.f32 %v1187_v46, %v1180_v31 }
0x11e3   :  { %1191 = vrot.lane.b32.xlu1 %v1189_v48, %s1628_s26 }
0x1225   :  { %v1257_v34 = vpop.permute.xlu0 %1256 }
0x1226   :  { %v1259_v50 = vadd.f32 %v1257_v34, %v1249_v49 }
0x1228   :  { %1534 = vtanh.f32 %v1259_v50 }
0x122e   :  { %v1535_v51 = vpop.eup %1534 }
0x122f   :  { %1262 = vrot.lane.b32.xlu2 %v1535_v51, %s1627_s3 }
0x1255   :  { %v1192_v54 = vpop.permute.xlu1 %1191 }
0x1256   :  { %v1194_v56 = vadd.f32 %v1192_v54, %v1184_v53 }
0x1258   :  { %1536 = vtanh.f32 %v1194_v56 }
0x125e   :  { %v1537_v58 = vpop.eup %1536 }
0x125f   :  { %1197 = vrot.lane.b32.xlu0 %v1537_v58, %s1627_s3 }
0x1289   :  { %v1263_v61 = vpop.permute.xlu2 %1262 }
0x128a   :  { %v1265_v35 = vmul.f32 %v1263_v61, %v1242_v40 }
0x128c   :  { %v1292_v62 = vrot.slane %v1265_v35, 6 }
0x128e   :  { %1293 = vrot.lane.b32.xlu2 %v1292_v62, %s1628_s26 }
0x12d1   :  { %v1198_v59 = vpop.permute.xlu0 %1197 }
0x12d2   :  { %v1200_v0 = vmul.f32 %v1198_v59, %v1180_v31 }
0x12d4   :  { %1267 = vrot.lane.b32.xlu1 %v1200_v0, %s1628_s26 }
0x12e8   :  { %v1294_v4 = vpop.permute.xlu2 %1293 }
0x12e9   :  { %1435 = vmatmul.msk.f32.vlgmr.msra.gmra.mxu1 %vm99_vm0, %v1294_v4 }
0x1346   :  { %v1268_v47 = vpop.permute.xlu1 %1267 }
0x1347   :  { %1370 = vst.msk [vmem:[%s2033_s7 + $0xc] sm:$0x3] %vm1357_vm13, %v1268_v47  ;;  %1434 = vmatmul.msk.f32.vlgmr.msrb.gmra.mxu0 %vm99_vm0, %v1268_v47 }
0x1366   :  { %v1314_v63 = vpop.f32.mrf.mxu1 }
0x13c4   :  { %v1288_v8 = vpop.f32.mrf.mxu0 }
0x13c5   :  { %v1315_v9 = vadd.f32 %v1314_v63, %v1288_v8 }
0x13c7   :  { %v1317_v11 = vadd.f32 %v1544_v24, %v1315_v9 }
0x13c9   :  { %v1436_v12 = vmul.f32 -1.442695, %v1317_v11 }
0x13cb   :  { %1538 = vpow2.f32 %v1436_v12 }
0x13d1   :  { %v1539_v55 = vpop.eup %1538 }
0x13d2   :  { %v1321_v14 = vadd.f32 1.0, %v1539_v55 }
0x13d4   :  { %1540 = vrcp.f32 %v1321_v14  ;;  %v1333_v1 = vand.u32 2147483648, %v1321_v14  ;;  %v1331_v19 = vand.u32 2147483647, %v1321_v14  ;;  %vm1327_vm6 = vweird.f32 %v1321_v14 }
0x13d6   :  { %v1334_v21 = vor.u32 1.1754944e-38, %v1333_v1  ;;  %vm1332_vm0 = vcmp.eq.f32.partialorder %v1331_v19, 8.507059e+37 }
0x13da   :  { %v1541_v15 = vpop.eup %1540 }
0x13db   :  { %v1323_v60 = vmul.f32 %v1541_v15, %v1321_v14  ;;  %vm1328_vm5 = vweird.f32 %v1541_v15 }
0x13dc   :  { %vm1329_vm7 = vmor %vm1327_vm6, %vm1328_vm5 }
0x13dd   :  { %v1324_v18 = vsub.f32 1.0, %v1323_v60 }
0x13df   :  { %v1325_v16 = vmul.f32 %v1541_v15, %v1324_v18 }
0x13e1   :  { %v1326_v20 = vadd.f32 %v1541_v15, %v1325_v16 }
0x13e3   :  { %v1330_v22 = vsel %vm1329_vm7, %v1541_v15, %v1326_v20 }
0x13e4   :  { %v1335_v6 = vsel %vm1332_vm0, %v1334_v21, %v1330_v22 }
0x13e5   :  { %v1337_v36 = vmul.f32 2.0, %v1335_v6  ;;  %v1339_v40 = vmul.f32 %v1335_v6, %v1194_v56 }
0x13e7   :  { %v1437_v37 = vadd.f32 -1.0, %v1337_v36 }
0x13e9   :  { %1341 = vrot.lane.b32.xlu0 %v1437_v37, %s1627_s3 }
0x145b   :  { %v1342_v38 = vpop.permute.xlu0 %1341 }
0x145c   :  { %v1344_v39 = vmul.f32 %v1342_v38, %v1335_v6 }
0x145e   :  { %1346 = vrot.lane.b32.xlu1 %v1344_v39, %s1628_s26 }
0x14d0   :  { %v1347_v17 = vpop.permute.xlu1 %1346 }
0x14d1   :  { %v1349_v41 = vadd.f32 %v1347_v17, %v1339_v40 }
0x14d3   :  { %1542 = vtanh.f32 %v1349_v41 }
0x14d9   :  { %v1543_v42 = vpop.eup %1542 }
0x14da   :  { %1352 = vrot.lane.b32.xlu2 %v1543_v42, %s1627_s3 }
0x1534   :  { %v1353_v43 = vpop.permute.xlu2 %1352 }
0x1535   :  { %v1355_v23 = vmul.f32 %v1353_v43, %v1335_v6 }
0x1537   :  { %1372 = vrot.lane.b32.xlu0 %v1355_v23, %s1628_s26 }
0x15a9   :  { %v1373_v24 = vpop.permute.xlu0 %1372 }
0x15aa   :  { %1375 = vst.msk [vmem:[%s2033_s7 + $0xe] sm:$0x3] %vm1357_vm13, %v1373_v24 }
0x15ab   :  { %1380 = vsyncpa [#allocation3], 1 }
0x15ac   :  { %1381 = vsyncpa [#allocation5], 1 }

</bundles_post_ra>
